<compile_context>
chip_gen: v6e
topology: v6e:2x2x1
jax: 0.10.0
libtpu: 0.0.40
codegen_flags: <defaults>
</compile_context>

<pallas_src>
import functools

import jax
import jax.numpy as jnp
from jax import lax
from jax.experimental import pallas as pl
from jax.experimental.pallas import tpu as pltpu

LANE = 128


def _se_kernel(x_ref, w1_ref, b1_ref, w2_ref, b2_ref, o_ref, *, ch, compute_dtype):
    """Per-pixel channel MLP on lane-dense spatial chunks.

    x_ref / o_ref : (NB, Cin, TS, 128) VMEM tiles (spatial on sublane x lane).
    w1_ref (Cin, Cmid), b1_ref (Cmid,), w2_ref (Cmid, Cin), b2_ref (Cin,): SMEM.
    `ch` is the sublane chunk size (kept small so the live set fits in vregs).
    """
    nb, cin, ts, lane = x_ref.shape
    cmid = b1_ref.shape[0]
    cdt = compute_dtype

    # Hoist all (tiny) SMEM scalar reads once, cast to the compute dtype.
    w1s = [[w1_ref[c, m].astype(cdt) for m in range(cmid)] for c in range(cin)]
    b1s = [b1_ref[m].astype(cdt) for m in range(cmid)]
    w2s = [[w2_ref[m, c].astype(cdt) for c in range(cin)] for m in range(cmid)]
    b2s = [b2_ref[c].astype(cdt) for c in range(cin)]

    def channel_mlp_chunk(b, r0, nrows):
        rows = pl.ds(r0, nrows)
        # Load each input channel chunk once (dense (nrows, 128) slabs).
        xs = [x_ref[b, c, rows, :].astype(cdt) for c in range(cin)]
        # Output accumulators start from the b2 splat (created once per chunk).
        ys = [jnp.full((nrows, lane), b2s[c], dtype=cdt) for c in range(cin)]
        # Interleaved accumulation: produce each hidden channel h_m and fold it
        # immediately into all Cin output accumulators (~2*Cin+2 live slabs).
        for m in range(cmid):
            acc = xs[0] * w1s[0][m]
            for c in range(1, cin):
                acc = acc + xs[c] * w1s[c][m]
            h_m = jnp.maximum(acc + b1s[m], 0)            # ReLU
            for c in range(cin):
                ys[c] = ys[c] + h_m * w2s[m][c]
        for c in range(cin):
            o_ref[b, c, rows, :] = ys[c].astype(o_ref.dtype)

    n_full = ts // ch
    rem = ts - n_full * ch

    for b in range(nb):                      # NB is static and small
        if n_full:
            def chunk_body(k, carry, _b=b):
                channel_mlp_chunk(_b, pl.multiple_of(k * ch, ch), ch)
                return carry
            lax.fori_loop(0, n_full, chunk_body, 0, unroll=True)
        if rem:                              # ragged tail (static size)
            channel_mlp_chunk(b, n_full * ch, rem)


def squeeze_excitation_forward(x_nchw, w1, b1, w2, b2, *, tile_s=512,
                               compute_dtype=None):
    """x_nchw: (N, Cin, H, W). w1: (Cin, Cmid), b1: (Cmid,), w2: (Cmid, Cin), b2: (Cin,)."""
    n, cin, h, w = x_nchw.shape
    cmid = int(b1.shape[0])
    hw = h * w

    # View the activation as (N, Cin, S, 128): a free reshape of contiguous
    # NCHW (no transpose, no data movement).
    x3 = x_nchw.reshape(n, cin, hw)
    pad = (-hw) % LANE
    if pad:
        # TODO(synk): avoid this full padded copy when H*W % 128 != 0 (handle the
        # ragged tail with a masked last block instead); not hit for typical maps.
        x3 = jnp.pad(x3, ((0, 0), (0, 0), (0, pad)))
    s = (hw + pad) // LANE
    x4 = x3.reshape(n, cin, s, LANE)

    if compute_dtype is None:
        # f32 in -> f32 math (safe on v5e); pass jnp.bfloat16 on v6e/v7x for ~1.5-2x.
        compute_dtype = x_nchw.dtype

    # Spatial tile (sublane rows per block): large tiles amortize the ~0.35us
    # per-grid-step overhead and give big, efficient DMAs.
    if s <= tile_s:
        ts = s
    else:
        ts = max(8, (tile_s // 8) * 8)
    s_blocks = pl.cdiv(s, ts)

    # Batch packing: target ~256 KiB of activation per block so tiny feature
    # maps are not per-step-overhead dominated.
    itemsize = x_nchw.dtype.itemsize
    per_image_block = cin * ts * LANE * itemsize
    nb = max(1, min(n, (256 * 1024) // max(per_image_block, 1)))
    while n % nb:
        nb -= 1
    # Keep >=2 parallel grid steps when possible so the v7x megacore can shard
    # the grid across both TensorCores (one extra ~0.35us step elsewhere).
    if s_blocks == 1 and n // nb == 1 and n > 1:
        nb = max(1, nb // 2)
        while n % nb:
            nb -= 1
    grid = (n // nb, s_blocks)

    # In-kernel sublane chunk: <=16 rows keeps ~20 live vregs (no VMEM spills).
    ch = min(ts, 16)

    flops = 2 * n * hw * 2 * cin * cmid
    bytes_accessed = 2 * n * cin * hw * itemsize

    smem_spec = pl.BlockSpec(memory_space=pltpu.MemorySpace.SMEM)
    kernel = functools.partial(_se_kernel, ch=ch, compute_dtype=compute_dtype)

    out4 = pl.pallas_call(
        kernel,
        out_shape=jax.ShapeDtypeStruct((n, cin, s, LANE), x_nchw.dtype),
        grid_spec=pltpu.PrefetchScalarGridSpec(
            num_scalar_prefetch=0,
            grid=grid,
            in_specs=[
                # NOTE: on v5e, if profiling shows exposed DMA at step boundaries,
                # add pipeline_mode=pl.Buffered(3) here.
                pl.BlockSpec((nb, cin, ts, LANE), lambda i, j: (i, 0, j, 0)),
                smem_spec,   # w1 (Cin, Cmid)   -- invariant scalars in SMEM
                smem_spec,   # b1 (Cmid,)
                smem_spec,   # w2 (Cmid, Cin)
                smem_spec,   # b2 (Cin,)
            ],
            out_specs=pl.BlockSpec((nb, cin, ts, LANE), lambda i, j: (i, 0, j, 0)),
        ),
        compiler_params=pltpu.CompilerParams(
            dimension_semantics=("parallel", "parallel")),
        cost_estimate=pl.CostEstimate(
            flops=flops, transcendentals=0, bytes_accessed=bytes_accessed),
    )(x4, w1, b1, w2, b2)

    out = out4.reshape(n, cin, s * LANE)
    if pad:
        out = out[:, :, :hw]
    return out.reshape(n, cin, h, w)


def _reference(x_nchw, w1, b1, w2, b2):
    # Pure-JAX reference of the same math (1x1 convs == channel matmuls).
    x = jnp.transpose(x_nchw, (0, 2, 3, 1))              # NHWC
    hmid = jnp.maximum(jnp.einsum("nhwc,cm->nhwm", x, w1) + b1, 0.0)
    y = jnp.einsum("nhwm,mc->nhwc", hmid, w2) + b2
    return jnp.transpose(y, (0, 3, 1, 2))


if __name__ == "__main__":
    # Module config: in_channels=4, expansion=4 -> mid_channels=16
    in_channels = 4
    expansion = 4
    mid_channels = int(in_channels * expansion)

    key = jax.random.PRNGKey(0)
    kx, k1, k2 = jax.random.split(key, 3)

    # Deterministic parameter init (kaiming-normal-like with a=1; biases zero,
    # matching init_weight()).  PyTorch fc1.weight is (mid, in, 1, 1); we store
    # its matmul form (in, mid).
    fan_in1 = in_channels
    w1 = (jax.random.normal(k1, (in_channels, mid_channels), jnp.float32)
          * (2.0 / (1.0 + 1.0**2) / fan_in1) ** 0.5)
    b1 = jnp.zeros((mid_channels,), jnp.float32)
    fan_in2 = mid_channels
    w2 = (jax.random.normal(k2, (mid_channels, in_channels), jnp.float32)
          * (2.0 / (1.0 + 1.0**2) / fan_in2) ** 0.5)
    b2 = jnp.zeros((in_channels,), jnp.float32)

    x = jax.random.normal(kx, (2, in_channels, 16, 16), jnp.float32)  # NCHW

    out = squeeze_excitation_forward(x, w1, b1, w2, b2)
    out = jax.block_until_ready(out)

    ref = _reference(x, w1, b1, w2, b2)
    assert out.shape == ref.shape == x.shape
    assert jnp.allclose(out, ref, atol=1e-5, rtol=1e-5)

    print("KERNEL_OK")
</pallas_src>

<mosaic_0001>
module attributes {stable_mosaic.version = 11 : i64} {
  func.func @_se_kernel(%arg0: i32, %arg1: i32, %arg2: memref<1x4x2x128xf32, #tpu.memory_space<vmem>>, %arg3: memref<4x16xf32, #tpu.memory_space<smem>>, %arg4: memref<16xf32, #tpu.memory_space<smem>>, %arg5: memref<16x4xf32, #tpu.memory_space<smem>>, %arg6: memref<4xf32, #tpu.memory_space<smem>>, %arg7: memref<1x4x2x128xf32, #tpu.memory_space<vmem>>) attributes {dimension_semantics = [#tpu.dimension_semantics<parallel>, #tpu.dimension_semantics<parallel>], iteration_bounds = array<i64: 2, 1>, scalar_prefetch = 0 : i64, scratch_operands = 0 : i64, tpu.core_type = #tpu.core_type<tc>, window_params = [{transform_indices = @transform_0, window_bounds = array<i64: 1, 4, 2, 128>}, {transform_indices = @transform_1, window_bounds = array<i64: 4, 16>}, {transform_indices = @transform_2, window_bounds = array<i64: 16>}, {transform_indices = @transform_3, window_bounds = array<i64: 16, 4>}, {transform_indices = @transform_4, window_bounds = array<i64: 4>}, {transform_indices = @transform_5, window_bounds = array<i64: 1, 4, 2, 128>}]} {
    %c0 = arith.constant 0 : index
    %c0_0 = arith.constant 0 : index
    %0 = memref.load %arg3[%c0, %c0_0] : memref<4x16xf32, #tpu.memory_space<smem>>
    %c0_1 = arith.constant 0 : index
    %c1 = arith.constant 1 : index
    %1 = memref.load %arg3[%c0_1, %c1] : memref<4x16xf32, #tpu.memory_space<smem>>
    %c0_2 = arith.constant 0 : index
    %c2 = arith.constant 2 : index
    %2 = memref.load %arg3[%c0_2, %c2] : memref<4x16xf32, #tpu.memory_space<smem>>
    %c0_3 = arith.constant 0 : index
    %c3 = arith.constant 3 : index
    %3 = memref.load %arg3[%c0_3, %c3] : memref<4x16xf32, #tpu.memory_space<smem>>
    %c0_4 = arith.constant 0 : index
    %c4 = arith.constant 4 : index
    %4 = memref.load %arg3[%c0_4, %c4] : memref<4x16xf32, #tpu.memory_space<smem>>
    %c0_5 = arith.constant 0 : index
    %c5 = arith.constant 5 : index
    %5 = memref.load %arg3[%c0_5, %c5] : memref<4x16xf32, #tpu.memory_space<smem>>
    %c0_6 = arith.constant 0 : index
    %c6 = arith.constant 6 : index
    %6 = memref.load %arg3[%c0_6, %c6] : memref<4x16xf32, #tpu.memory_space<smem>>
    %c0_7 = arith.constant 0 : index
    %c7 = arith.constant 7 : index
    %7 = memref.load %arg3[%c0_7, %c7] : memref<4x16xf32, #tpu.memory_space<smem>>
    %c0_8 = arith.constant 0 : index
    %c8 = arith.constant 8 : index
    %8 = memref.load %arg3[%c0_8, %c8] : memref<4x16xf32, #tpu.memory_space<smem>>
    %c0_9 = arith.constant 0 : index
    %c9 = arith.constant 9 : index
    %9 = memref.load %arg3[%c0_9, %c9] : memref<4x16xf32, #tpu.memory_space<smem>>
    %c0_10 = arith.constant 0 : index
    %c10 = arith.constant 10 : index
    %10 = memref.load %arg3[%c0_10, %c10] : memref<4x16xf32, #tpu.memory_space<smem>>
    %c0_11 = arith.constant 0 : index
    %c11 = arith.constant 11 : index
    %11 = memref.load %arg3[%c0_11, %c11] : memref<4x16xf32, #tpu.memory_space<smem>>
    %c0_12 = arith.constant 0 : index
    %c12 = arith.constant 12 : index
    %12 = memref.load %arg3[%c0_12, %c12] : memref<4x16xf32, #tpu.memory_space<smem>>
    %c0_13 = arith.constant 0 : index
    %c13 = arith.constant 13 : index
    %13 = memref.load %arg3[%c0_13, %c13] : memref<4x16xf32, #tpu.memory_space<smem>>
    %c0_14 = arith.constant 0 : index
    %c14 = arith.constant 14 : index
    %14 = memref.load %arg3[%c0_14, %c14] : memref<4x16xf32, #tpu.memory_space<smem>>
    %c0_15 = arith.constant 0 : index
    %c15 = arith.constant 15 : index
    %15 = memref.load %arg3[%c0_15, %c15] : memref<4x16xf32, #tpu.memory_space<smem>>
    %c1_16 = arith.constant 1 : index
    %c0_17 = arith.constant 0 : index
    %16 = memref.load %arg3[%c1_16, %c0_17] : memref<4x16xf32, #tpu.memory_space<smem>>
    %c1_18 = arith.constant 1 : index
    %c1_19 = arith.constant 1 : index
    %17 = memref.load %arg3[%c1_18, %c1_19] : memref<4x16xf32, #tpu.memory_space<smem>>
    %c1_20 = arith.constant 1 : index
    %c2_21 = arith.constant 2 : index
    %18 = memref.load %arg3[%c1_20, %c2_21] : memref<4x16xf32, #tpu.memory_space<smem>>
    %c1_22 = arith.constant 1 : index
    %c3_23 = arith.constant 3 : index
    %19 = memref.load %arg3[%c1_22, %c3_23] : memref<4x16xf32, #tpu.memory_space<smem>>
    %c1_24 = arith.constant 1 : index
    %c4_25 = arith.constant 4 : index
    %20 = memref.load %arg3[%c1_24, %c4_25] : memref<4x16xf32, #tpu.memory_space<smem>>
    %c1_26 = arith.constant 1 : index
    %c5_27 = arith.constant 5 : index
    %21 = memref.load %arg3[%c1_26, %c5_27] : memref<4x16xf32, #tpu.memory_space<smem>>
    %c1_28 = arith.constant 1 : index
    %c6_29 = arith.constant 6 : index
    %22 = memref.load %arg3[%c1_28, %c6_29] : memref<4x16xf32, #tpu.memory_space<smem>>
    %c1_30 = arith.constant 1 : index
    %c7_31 = arith.constant 7 : index
    %23 = memref.load %arg3[%c1_30, %c7_31] : memref<4x16xf32, #tpu.memory_space<smem>>
    %c1_32 = arith.constant 1 : index
    %c8_33 = arith.constant 8 : index
    %24 = memref.load %arg3[%c1_32, %c8_33] : memref<4x16xf32, #tpu.memory_space<smem>>
    %c1_34 = arith.constant 1 : index
    %c9_35 = arith.constant 9 : index
    %25 = memref.load %arg3[%c1_34, %c9_35] : memref<4x16xf32, #tpu.memory_space<smem>>
    %c1_36 = arith.constant 1 : index
    %c10_37 = arith.constant 10 : index
    %26 = memref.load %arg3[%c1_36, %c10_37] : memref<4x16xf32, #tpu.memory_space<smem>>
    %c1_38 = arith.constant 1 : index
    %c11_39 = arith.constant 11 : index
    %27 = memref.load %arg3[%c1_38, %c11_39] : memref<4x16xf32, #tpu.memory_space<smem>>
    %c1_40 = arith.constant 1 : index
    %c12_41 = arith.constant 12 : index
    %28 = memref.load %arg3[%c1_40, %c12_41] : memref<4x16xf32, #tpu.memory_space<smem>>
    %c1_42 = arith.constant 1 : index
    %c13_43 = arith.constant 13 : index
    %29 = memref.load %arg3[%c1_42, %c13_43] : memref<4x16xf32, #tpu.memory_space<smem>>
    %c1_44 = arith.constant 1 : index
    %c14_45 = arith.constant 14 : index
    %30 = memref.load %arg3[%c1_44, %c14_45] : memref<4x16xf32, #tpu.memory_space<smem>>
    %c1_46 = arith.constant 1 : index
    %c15_47 = arith.constant 15 : index
    %31 = memref.load %arg3[%c1_46, %c15_47] : memref<4x16xf32, #tpu.memory_space<smem>>
    %c2_48 = arith.constant 2 : index
    %c0_49 = arith.constant 0 : index
    %32 = memref.load %arg3[%c2_48, %c0_49] : memref<4x16xf32, #tpu.memory_space<smem>>
    %c2_50 = arith.constant 2 : index
    %c1_51 = arith.constant 1 : index
    %33 = memref.load %arg3[%c2_50, %c1_51] : memref<4x16xf32, #tpu.memory_space<smem>>
    %c2_52 = arith.constant 2 : index
    %c2_53 = arith.constant 2 : index
    %34 = memref.load %arg3[%c2_52, %c2_53] : memref<4x16xf32, #tpu.memory_space<smem>>
    %c2_54 = arith.constant 2 : index
    %c3_55 = arith.constant 3 : index
    %35 = memref.load %arg3[%c2_54, %c3_55] : memref<4x16xf32, #tpu.memory_space<smem>>
    %c2_56 = arith.constant 2 : index
    %c4_57 = arith.constant 4 : index
    %36 = memref.load %arg3[%c2_56, %c4_57] : memref<4x16xf32, #tpu.memory_space<smem>>
    %c2_58 = arith.constant 2 : index
    %c5_59 = arith.constant 5 : index
    %37 = memref.load %arg3[%c2_58, %c5_59] : memref<4x16xf32, #tpu.memory_space<smem>>
    %c2_60 = arith.constant 2 : index
    %c6_61 = arith.constant 6 : index
    %38 = memref.load %arg3[%c2_60, %c6_61] : memref<4x16xf32, #tpu.memory_space<smem>>
    %c2_62 = arith.constant 2 : index
    %c7_63 = arith.constant 7 : index
    %39 = memref.load %arg3[%c2_62, %c7_63] : memref<4x16xf32, #tpu.memory_space<smem>>
    %c2_64 = arith.constant 2 : index
    %c8_65 = arith.constant 8 : index
    %40 = memref.load %arg3[%c2_64, %c8_65] : memref<4x16xf32, #tpu.memory_space<smem>>
    %c2_66 = arith.constant 2 : index
    %c9_67 = arith.constant 9 : index
    %41 = memref.load %arg3[%c2_66, %c9_67] : memref<4x16xf32, #tpu.memory_space<smem>>
    %c2_68 = arith.constant 2 : index
    %c10_69 = arith.constant 10 : index
    %42 = memref.load %arg3[%c2_68, %c10_69] : memref<4x16xf32, #tpu.memory_space<smem>>
    %c2_70 = arith.constant 2 : index
    %c11_71 = arith.constant 11 : index
    %43 = memref.load %arg3[%c2_70, %c11_71] : memref<4x16xf32, #tpu.memory_space<smem>>
    %c2_72 = arith.constant 2 : index
    %c12_73 = arith.constant 12 : index
    %44 = memref.load %arg3[%c2_72, %c12_73] : memref<4x16xf32, #tpu.memory_space<smem>>
    %c2_74 = arith.constant 2 : index
    %c13_75 = arith.constant 13 : index
    %45 = memref.load %arg3[%c2_74, %c13_75] : memref<4x16xf32, #tpu.memory_space<smem>>
    %c2_76 = arith.constant 2 : index
    %c14_77 = arith.constant 14 : index
    %46 = memref.load %arg3[%c2_76, %c14_77] : memref<4x16xf32, #tpu.memory_space<smem>>
    %c2_78 = arith.constant 2 : index
    %c15_79 = arith.constant 15 : index
    %47 = memref.load %arg3[%c2_78, %c15_79] : memref<4x16xf32, #tpu.memory_space<smem>>
    %c3_80 = arith.constant 3 : index
    %c0_81 = arith.constant 0 : index
    %48 = memref.load %arg3[%c3_80, %c0_81] : memref<4x16xf32, #tpu.memory_space<smem>>
    %c3_82 = arith.constant 3 : index
    %c1_83 = arith.constant 1 : index
    %49 = memref.load %arg3[%c3_82, %c1_83] : memref<4x16xf32, #tpu.memory_space<smem>>
    %c3_84 = arith.constant 3 : index
    %c2_85 = arith.constant 2 : index
    %50 = memref.load %arg3[%c3_84, %c2_85] : memref<4x16xf32, #tpu.memory_space<smem>>
    %c3_86 = arith.constant 3 : index
    %c3_87 = arith.constant 3 : index
    %51 = memref.load %arg3[%c3_86, %c3_87] : memref<4x16xf32, #tpu.memory_space<smem>>
    %c3_88 = arith.constant 3 : index
    %c4_89 = arith.constant 4 : index
    %52 = memref.load %arg3[%c3_88, %c4_89] : memref<4x16xf32, #tpu.memory_space<smem>>
    %c3_90 = arith.constant 3 : index
    %c5_91 = arith.constant 5 : index
    %53 = memref.load %arg3[%c3_90, %c5_91] : memref<4x16xf32, #tpu.memory_space<smem>>
    %c3_92 = arith.constant 3 : index
    %c6_93 = arith.constant 6 : index
    %54 = memref.load %arg3[%c3_92, %c6_93] : memref<4x16xf32, #tpu.memory_space<smem>>
    %c3_94 = arith.constant 3 : index
    %c7_95 = arith.constant 7 : index
    %55 = memref.load %arg3[%c3_94, %c7_95] : memref<4x16xf32, #tpu.memory_space<smem>>
    %c3_96 = arith.constant 3 : index
    %c8_97 = arith.constant 8 : index
    %56 = memref.load %arg3[%c3_96, %c8_97] : memref<4x16xf32, #tpu.memory_space<smem>>
    %c3_98 = arith.constant 3 : index
    %c9_99 = arith.constant 9 : index
    %57 = memref.load %arg3[%c3_98, %c9_99] : memref<4x16xf32, #tpu.memory_space<smem>>
    %c3_100 = arith.constant 3 : index
    %c10_101 = arith.constant 10 : index
    %58 = memref.load %arg3[%c3_100, %c10_101] : memref<4x16xf32, #tpu.memory_space<smem>>
    %c3_102 = arith.constant 3 : index
    %c11_103 = arith.constant 11 : index
    %59 = memref.load %arg3[%c3_102, %c11_103] : memref<4x16xf32, #tpu.memory_space<smem>>
    %c3_104 = arith.constant 3 : index
    %c12_105 = arith.constant 12 : index
    %60 = memref.load %arg3[%c3_104, %c12_105] : memref<4x16xf32, #tpu.memory_space<smem>>
    %c3_106 = arith.constant 3 : index
    %c13_107 = arith.constant 13 : index
    %61 = memref.load %arg3[%c3_106, %c13_107] : memref<4x16xf32, #tpu.memory_space<smem>>
    %c3_108 = arith.constant 3 : index
    %c14_109 = arith.constant 14 : index
    %62 = memref.load %arg3[%c3_108, %c14_109] : memref<4x16xf32, #tpu.memory_space<smem>>
    %c3_110 = arith.constant 3 : index
    %c15_111 = arith.constant 15 : index
    %63 = memref.load %arg3[%c3_110, %c15_111] : memref<4x16xf32, #tpu.memory_space<smem>>
    %c0_112 = arith.constant 0 : index
    %64 = memref.load %arg4[%c0_112] : memref<16xf32, #tpu.memory_space<smem>>
    %c1_113 = arith.constant 1 : index
    %65 = memref.load %arg4[%c1_113] : memref<16xf32, #tpu.memory_space<smem>>
    %c2_114 = arith.constant 2 : index
    %66 = memref.load %arg4[%c2_114] : memref<16xf32, #tpu.memory_space<smem>>
    %c3_115 = arith.constant 3 : index
    %67 = memref.load %arg4[%c3_115] : memref<16xf32, #tpu.memory_space<smem>>
    %c4_116 = arith.constant 4 : index
    %68 = memref.load %arg4[%c4_116] : memref<16xf32, #tpu.memory_space<smem>>
    %c5_117 = arith.constant 5 : index
    %69 = memref.load %arg4[%c5_117] : memref<16xf32, #tpu.memory_space<smem>>
    %c6_118 = arith.constant 6 : index
    %70 = memref.load %arg4[%c6_118] : memref<16xf32, #tpu.memory_space<smem>>
    %c7_119 = arith.constant 7 : index
    %71 = memref.load %arg4[%c7_119] : memref<16xf32, #tpu.memory_space<smem>>
    %c8_120 = arith.constant 8 : index
    %72 = memref.load %arg4[%c8_120] : memref<16xf32, #tpu.memory_space<smem>>
    %c9_121 = arith.constant 9 : index
    %73 = memref.load %arg4[%c9_121] : memref<16xf32, #tpu.memory_space<smem>>
    %c10_122 = arith.constant 10 : index
    %74 = memref.load %arg4[%c10_122] : memref<16xf32, #tpu.memory_space<smem>>
    %c11_123 = arith.constant 11 : index
    %75 = memref.load %arg4[%c11_123] : memref<16xf32, #tpu.memory_space<smem>>
    %c12_124 = arith.constant 12 : index
    %76 = memref.load %arg4[%c12_124] : memref<16xf32, #tpu.memory_space<smem>>
    %c13_125 = arith.constant 13 : index
    %77 = memref.load %arg4[%c13_125] : memref<16xf32, #tpu.memory_space<smem>>
    %c14_126 = arith.constant 14 : index
    %78 = memref.load %arg4[%c14_126] : memref<16xf32, #tpu.memory_space<smem>>
    %c15_127 = arith.constant 15 : index
    %79 = memref.load %arg4[%c15_127] : memref<16xf32, #tpu.memory_space<smem>>
    %c0_128 = arith.constant 0 : index
    %c0_129 = arith.constant 0 : index
    %80 = memref.load %arg5[%c0_128, %c0_129] : memref<16x4xf32, #tpu.memory_space<smem>>
    %c0_130 = arith.constant 0 : index
    %c1_131 = arith.constant 1 : index
    %81 = memref.load %arg5[%c0_130, %c1_131] : memref<16x4xf32, #tpu.memory_space<smem>>
    %c0_132 = arith.constant 0 : index
    %c2_133 = arith.constant 2 : index
    %82 = memref.load %arg5[%c0_132, %c2_133] : memref<16x4xf32, #tpu.memory_space<smem>>
    %c0_134 = arith.constant 0 : index
    %c3_135 = arith.constant 3 : index
    %83 = memref.load %arg5[%c0_134, %c3_135] : memref<16x4xf32, #tpu.memory_space<smem>>
    %c1_136 = arith.constant 1 : index
    %c0_137 = arith.constant 0 : index
    %84 = memref.load %arg5[%c1_136, %c0_137] : memref<16x4xf32, #tpu.memory_space<smem>>
    %c1_138 = arith.constant 1 : index
    %c1_139 = arith.constant 1 : index
    %85 = memref.load %arg5[%c1_138, %c1_139] : memref<16x4xf32, #tpu.memory_space<smem>>
    %c1_140 = arith.constant 1 : index
    %c2_141 = arith.constant 2 : index
    %86 = memref.load %arg5[%c1_140, %c2_141] : memref<16x4xf32, #tpu.memory_space<smem>>
    %c1_142 = arith.constant 1 : index
    %c3_143 = arith.constant 3 : index
    %87 = memref.load %arg5[%c1_142, %c3_143] : memref<16x4xf32, #tpu.memory_space<smem>>
    %c2_144 = arith.constant 2 : index
    %c0_145 = arith.constant 0 : index
    %88 = memref.load %arg5[%c2_144, %c0_145] : memref<16x4xf32, #tpu.memory_space<smem>>
    %c2_146 = arith.constant 2 : index
    %c1_147 = arith.constant 1 : index
    %89 = memref.load %arg5[%c2_146, %c1_147] : memref<16x4xf32, #tpu.memory_space<smem>>
    %c2_148 = arith.constant 2 : index
    %c2_149 = arith.constant 2 : index
    %90 = memref.load %arg5[%c2_148, %c2_149] : memref<16x4xf32, #tpu.memory_space<smem>>
    %c2_150 = arith.constant 2 : index
    %c3_151 = arith.constant 3 : index
    %91 = memref.load %arg5[%c2_150, %c3_151] : memref<16x4xf32, #tpu.memory_space<smem>>
    %c3_152 = arith.constant 3 : index
    %c0_153 = arith.constant 0 : index
    %92 = memref.load %arg5[%c3_152, %c0_153] : memref<16x4xf32, #tpu.memory_space<smem>>
    %c3_154 = arith.constant 3 : index
    %c1_155 = arith.constant 1 : index
    %93 = memref.load %arg5[%c3_154, %c1_155] : memref<16x4xf32, #tpu.memory_space<smem>>
    %c3_156 = arith.constant 3 : index
    %c2_157 = arith.constant 2 : index
    %94 = memref.load %arg5[%c3_156, %c2_157] : memref<16x4xf32, #tpu.memory_space<smem>>
    %c3_158 = arith.constant 3 : index
    %c3_159 = arith.constant 3 : index
    %95 = memref.load %arg5[%c3_158, %c3_159] : memref<16x4xf32, #tpu.memory_space<smem>>
    %c4_160 = arith.constant 4 : index
    %c0_161 = arith.constant 0 : index
    %96 = memref.load %arg5[%c4_160, %c0_161] : memref<16x4xf32, #tpu.memory_space<smem>>
    %c4_162 = arith.constant 4 : index
    %c1_163 = arith.constant 1 : index
    %97 = memref.load %arg5[%c4_162, %c1_163] : memref<16x4xf32, #tpu.memory_space<smem>>
    %c4_164 = arith.constant 4 : index
    %c2_165 = arith.constant 2 : index
    %98 = memref.load %arg5[%c4_164, %c2_165] : memref<16x4xf32, #tpu.memory_space<smem>>
    %c4_166 = arith.constant 4 : index
    %c3_167 = arith.constant 3 : index
    %99 = memref.load %arg5[%c4_166, %c3_167] : memref<16x4xf32, #tpu.memory_space<smem>>
    %c5_168 = arith.constant 5 : index
    %c0_169 = arith.constant 0 : index
    %100 = memref.load %arg5[%c5_168, %c0_169] : memref<16x4xf32, #tpu.memory_space<smem>>
    %c5_170 = arith.constant 5 : index
    %c1_171 = arith.constant 1 : index
    %101 = memref.load %arg5[%c5_170, %c1_171] : memref<16x4xf32, #tpu.memory_space<smem>>
    %c5_172 = arith.constant 5 : index
    %c2_173 = arith.constant 2 : index
    %102 = memref.load %arg5[%c5_172, %c2_173] : memref<16x4xf32, #tpu.memory_space<smem>>
    %c5_174 = arith.constant 5 : index
    %c3_175 = arith.constant 3 : index
    %103 = memref.load %arg5[%c5_174, %c3_175] : memref<16x4xf32, #tpu.memory_space<smem>>
    %c6_176 = arith.constant 6 : index
    %c0_177 = arith.constant 0 : index
    %104 = memref.load %arg5[%c6_176, %c0_177] : memref<16x4xf32, #tpu.memory_space<smem>>
    %c6_178 = arith.constant 6 : index
    %c1_179 = arith.constant 1 : index
    %105 = memref.load %arg5[%c6_178, %c1_179] : memref<16x4xf32, #tpu.memory_space<smem>>
    %c6_180 = arith.constant 6 : index
    %c2_181 = arith.constant 2 : index
    %106 = memref.load %arg5[%c6_180, %c2_181] : memref<16x4xf32, #tpu.memory_space<smem>>
    %c6_182 = arith.constant 6 : index
    %c3_183 = arith.constant 3 : index
    %107 = memref.load %arg5[%c6_182, %c3_183] : memref<16x4xf32, #tpu.memory_space<smem>>
    %c7_184 = arith.constant 7 : index
    %c0_185 = arith.constant 0 : index
    %108 = memref.load %arg5[%c7_184, %c0_185] : memref<16x4xf32, #tpu.memory_space<smem>>
    %c7_186 = arith.constant 7 : index
    %c1_187 = arith.constant 1 : index
    %109 = memref.load %arg5[%c7_186, %c1_187] : memref<16x4xf32, #tpu.memory_space<smem>>
    %c7_188 = arith.constant 7 : index
    %c2_189 = arith.constant 2 : index
    %110 = memref.load %arg5[%c7_188, %c2_189] : memref<16x4xf32, #tpu.memory_space<smem>>
    %c7_190 = arith.constant 7 : index
    %c3_191 = arith.constant 3 : index
    %111 = memref.load %arg5[%c7_190, %c3_191] : memref<16x4xf32, #tpu.memory_space<smem>>
    %c8_192 = arith.constant 8 : index
    %c0_193 = arith.constant 0 : index
    %112 = memref.load %arg5[%c8_192, %c0_193] : memref<16x4xf32, #tpu.memory_space<smem>>
    %c8_194 = arith.constant 8 : index
    %c1_195 = arith.constant 1 : index
    %113 = memref.load %arg5[%c8_194, %c1_195] : memref<16x4xf32, #tpu.memory_space<smem>>
    %c8_196 = arith.constant 8 : index
    %c2_197 = arith.constant 2 : index
    %114 = memref.load %arg5[%c8_196, %c2_197] : memref<16x4xf32, #tpu.memory_space<smem>>
    %c8_198 = arith.constant 8 : index
    %c3_199 = arith.constant 3 : index
    %115 = memref.load %arg5[%c8_198, %c3_199] : memref<16x4xf32, #tpu.memory_space<smem>>
    %c9_200 = arith.constant 9 : index
    %c0_201 = arith.constant 0 : index
    %116 = memref.load %arg5[%c9_200, %c0_201] : memref<16x4xf32, #tpu.memory_space<smem>>
    %c9_202 = arith.constant 9 : index
    %c1_203 = arith.constant 1 : index
    %117 = memref.load %arg5[%c9_202, %c1_203] : memref<16x4xf32, #tpu.memory_space<smem>>
    %c9_204 = arith.constant 9 : index
    %c2_205 = arith.constant 2 : index
    %118 = memref.load %arg5[%c9_204, %c2_205] : memref<16x4xf32, #tpu.memory_space<smem>>
    %c9_206 = arith.constant 9 : index
    %c3_207 = arith.constant 3 : index
    %119 = memref.load %arg5[%c9_206, %c3_207] : memref<16x4xf32, #tpu.memory_space<smem>>
    %c10_208 = arith.constant 10 : index
    %c0_209 = arith.constant 0 : index
    %120 = memref.load %arg5[%c10_208, %c0_209] : memref<16x4xf32, #tpu.memory_space<smem>>
    %c10_210 = arith.constant 10 : index
    %c1_211 = arith.constant 1 : index
    %121 = memref.load %arg5[%c10_210, %c1_211] : memref<16x4xf32, #tpu.memory_space<smem>>
    %c10_212 = arith.constant 10 : index
    %c2_213 = arith.constant 2 : index
    %122 = memref.load %arg5[%c10_212, %c2_213] : memref<16x4xf32, #tpu.memory_space<smem>>
    %c10_214 = arith.constant 10 : index
    %c3_215 = arith.constant 3 : index
    %123 = memref.load %arg5[%c10_214, %c3_215] : memref<16x4xf32, #tpu.memory_space<smem>>
    %c11_216 = arith.constant 11 : index
    %c0_217 = arith.constant 0 : index
    %124 = memref.load %arg5[%c11_216, %c0_217] : memref<16x4xf32, #tpu.memory_space<smem>>
    %c11_218 = arith.constant 11 : index
    %c1_219 = arith.constant 1 : index
    %125 = memref.load %arg5[%c11_218, %c1_219] : memref<16x4xf32, #tpu.memory_space<smem>>
    %c11_220 = arith.constant 11 : index
    %c2_221 = arith.constant 2 : index
    %126 = memref.load %arg5[%c11_220, %c2_221] : memref<16x4xf32, #tpu.memory_space<smem>>
    %c11_222 = arith.constant 11 : index
    %c3_223 = arith.constant 3 : index
    %127 = memref.load %arg5[%c11_222, %c3_223] : memref<16x4xf32, #tpu.memory_space<smem>>
    %c12_224 = arith.constant 12 : index
    %c0_225 = arith.constant 0 : index
    %128 = memref.load %arg5[%c12_224, %c0_225] : memref<16x4xf32, #tpu.memory_space<smem>>
    %c12_226 = arith.constant 12 : index
    %c1_227 = arith.constant 1 : index
    %129 = memref.load %arg5[%c12_226, %c1_227] : memref<16x4xf32, #tpu.memory_space<smem>>
    %c12_228 = arith.constant 12 : index
    %c2_229 = arith.constant 2 : index
    %130 = memref.load %arg5[%c12_228, %c2_229] : memref<16x4xf32, #tpu.memory_space<smem>>
    %c12_230 = arith.constant 12 : index
    %c3_231 = arith.constant 3 : index
    %131 = memref.load %arg5[%c12_230, %c3_231] : memref<16x4xf32, #tpu.memory_space<smem>>
    %c13_232 = arith.constant 13 : index
    %c0_233 = arith.constant 0 : index
    %132 = memref.load %arg5[%c13_232, %c0_233] : memref<16x4xf32, #tpu.memory_space<smem>>
    %c13_234 = arith.constant 13 : index
    %c1_235 = arith.constant 1 : index
    %133 = memref.load %arg5[%c13_234, %c1_235] : memref<16x4xf32, #tpu.memory_space<smem>>
    %c13_236 = arith.constant 13 : index
    %c2_237 = arith.constant 2 : index
    %134 = memref.load %arg5[%c13_236, %c2_237] : memref<16x4xf32, #tpu.memory_space<smem>>
    %c13_238 = arith.constant 13 : index
    %c3_239 = arith.constant 3 : index
    %135 = memref.load %arg5[%c13_238, %c3_239] : memref<16x4xf32, #tpu.memory_space<smem>>
    %c14_240 = arith.constant 14 : index
    %c0_241 = arith.constant 0 : index
    %136 = memref.load %arg5[%c14_240, %c0_241] : memref<16x4xf32, #tpu.memory_space<smem>>
    %c14_242 = arith.constant 14 : index
    %c1_243 = arith.constant 1 : index
    %137 = memref.load %arg5[%c14_242, %c1_243] : memref<16x4xf32, #tpu.memory_space<smem>>
    %c14_244 = arith.constant 14 : index
    %c2_245 = arith.constant 2 : index
    %138 = memref.load %arg5[%c14_244, %c2_245] : memref<16x4xf32, #tpu.memory_space<smem>>
    %c14_246 = arith.constant 14 : index
    %c3_247 = arith.constant 3 : index
    %139 = memref.load %arg5[%c14_246, %c3_247] : memref<16x4xf32, #tpu.memory_space<smem>>
    %c15_248 = arith.constant 15 : index
    %c0_249 = arith.constant 0 : index
    %140 = memref.load %arg5[%c15_248, %c0_249] : memref<16x4xf32, #tpu.memory_space<smem>>
    %c15_250 = arith.constant 15 : index
    %c1_251 = arith.constant 1 : index
    %141 = memref.load %arg5[%c15_250, %c1_251] : memref<16x4xf32, #tpu.memory_space<smem>>
    %c15_252 = arith.constant 15 : index
    %c2_253 = arith.constant 2 : index
    %142 = memref.load %arg5[%c15_252, %c2_253] : memref<16x4xf32, #tpu.memory_space<smem>>
    %c15_254 = arith.constant 15 : index
    %c3_255 = arith.constant 3 : index
    %143 = memref.load %arg5[%c15_254, %c3_255] : memref<16x4xf32, #tpu.memory_space<smem>>
    %c0_256 = arith.constant 0 : index
    %144 = memref.load %arg6[%c0_256] : memref<4xf32, #tpu.memory_space<smem>>
    %c1_257 = arith.constant 1 : index
    %145 = memref.load %arg6[%c1_257] : memref<4xf32, #tpu.memory_space<smem>>
    %c2_258 = arith.constant 2 : index
    %146 = memref.load %arg6[%c2_258] : memref<4xf32, #tpu.memory_space<smem>>
    %c3_259 = arith.constant 3 : index
    %147 = memref.load %arg6[%c3_259] : memref<4xf32, #tpu.memory_space<smem>>
    %c0_i32 = arith.constant 0 : i32
    %c2_i32 = arith.constant 2 : i32
    %148 = arith.muli %c0_i32, %c2_i32 : i32
    %149 = tpu.assume_multiple %148, 2 : i32
    %c0_260 = arith.constant 0 : index
    %c0_261 = arith.constant 0 : index
    %150 = arith.index_cast %149 : i32 to index
    %c0_262 = arith.constant 0 : index
    %151 = vector.load %arg2[%c0_260, %c0_261, %150, %c0_262] : memref<1x4x2x128xf32, #tpu.memory_space<vmem>>, vector<1x1x2x128xf32>
    %152 = vector.shape_cast %151 : vector<1x1x2x128xf32> to vector<2x128xf32>
    %c0_263 = arith.constant 0 : index
    %c1_264 = arith.constant 1 : index
    %153 = arith.index_cast %149 : i32 to index
    %c0_265 = arith.constant 0 : index
    %154 = vector.load %arg2[%c0_263, %c1_264, %153, %c0_265] : memref<1x4x2x128xf32, #tpu.memory_space<vmem>>, vector<1x1x2x128xf32>
    %155 = vector.shape_cast %154 : vector<1x1x2x128xf32> to vector<2x128xf32>
    %c0_266 = arith.constant 0 : index
    %c2_267 = arith.constant 2 : index
    %156 = arith.index_cast %149 : i32 to index
    %c0_268 = arith.constant 0 : index
    %157 = vector.load %arg2[%c0_266, %c2_267, %156, %c0_268] : memref<1x4x2x128xf32, #tpu.memory_space<vmem>>, vector<1x1x2x128xf32>
    %158 = vector.shape_cast %157 : vector<1x1x2x128xf32> to vector<2x128xf32>
    %c0_269 = arith.constant 0 : index
    %c3_270 = arith.constant 3 : index
    %159 = arith.index_cast %149 : i32 to index
    %c0_271 = arith.constant 0 : index
    %160 = vector.load %arg2[%c0_269, %c3_270, %159, %c0_271] : memref<1x4x2x128xf32, #tpu.memory_space<vmem>>, vector<1x1x2x128xf32>
    %161 = vector.shape_cast %160 : vector<1x1x2x128xf32> to vector<2x128xf32>
    %162 = vector.broadcast %144 : f32 to vector<2x128xf32>
    %163 = vector.broadcast %145 : f32 to vector<2x128xf32>
    %164 = vector.broadcast %146 : f32 to vector<2x128xf32>
    %165 = vector.broadcast %147 : f32 to vector<2x128xf32>
    %166 = vector.broadcast %0 : f32 to vector<2x128xf32>
    %167 = arith.mulf %152, %166 : vector<2x128xf32>
    %168 = vector.broadcast %16 : f32 to vector<2x128xf32>
    %169 = arith.mulf %155, %168 : vector<2x128xf32>
    %170 = arith.addf %167, %169 : vector<2x128xf32>
    %171 = vector.broadcast %32 : f32 to vector<2x128xf32>
    %172 = arith.mulf %158, %171 : vector<2x128xf32>
    %173 = arith.addf %170, %172 : vector<2x128xf32>
    %174 = vector.broadcast %48 : f32 to vector<2x128xf32>
    %175 = arith.mulf %161, %174 : vector<2x128xf32>
    %176 = arith.addf %173, %175 : vector<2x128xf32>
    %177 = vector.broadcast %64 : f32 to vector<2x128xf32>
    %178 = arith.addf %176, %177 : vector<2x128xf32>
    %cst = arith.constant 0.000000e+00 : f32
    %179 = vector.broadcast %cst : f32 to vector<2x128xf32>
    %180 = arith.maximumf %178, %179 : vector<2x128xf32>
    %181 = vector.broadcast %80 : f32 to vector<2x128xf32>
    %182 = arith.mulf %180, %181 : vector<2x128xf32>
    %183 = arith.addf %162, %182 : vector<2x128xf32>
    %184 = vector.broadcast %81 : f32 to vector<2x128xf32>
    %185 = arith.mulf %180, %184 : vector<2x128xf32>
    %186 = arith.addf %163, %185 : vector<2x128xf32>
    %187 = vector.broadcast %82 : f32 to vector<2x128xf32>
    %188 = arith.mulf %180, %187 : vector<2x128xf32>
    %189 = arith.addf %164, %188 : vector<2x128xf32>
    %190 = vector.broadcast %83 : f32 to vector<2x128xf32>
    %191 = arith.mulf %180, %190 : vector<2x128xf32>
    %192 = arith.addf %165, %191 : vector<2x128xf32>
    %193 = vector.broadcast %1 : f32 to vector<2x128xf32>
    %194 = arith.mulf %152, %193 : vector<2x128xf32>
    %195 = vector.broadcast %17 : f32 to vector<2x128xf32>
    %196 = arith.mulf %155, %195 : vector<2x128xf32>
    %197 = arith.addf %194, %196 : vector<2x128xf32>
    %198 = vector.broadcast %33 : f32 to vector<2x128xf32>
    %199 = arith.mulf %158, %198 : vector<2x128xf32>
    %200 = arith.addf %197, %199 : vector<2x128xf32>
    %201 = vector.broadcast %49 : f32 to vector<2x128xf32>
    %202 = arith.mulf %161, %201 : vector<2x128xf32>
    %203 = arith.addf %200, %202 : vector<2x128xf32>
    %204 = vector.broadcast %65 : f32 to vector<2x128xf32>
    %205 = arith.addf %203, %204 : vector<2x128xf32>
    %cst_272 = arith.constant 0.000000e+00 : f32
    %206 = vector.broadcast %cst_272 : f32 to vector<2x128xf32>
    %207 = arith.maximumf %205, %206 : vector<2x128xf32>
    %208 = vector.broadcast %84 : f32 to vector<2x128xf32>
    %209 = arith.mulf %207, %208 : vector<2x128xf32>
    %210 = arith.addf %183, %209 : vector<2x128xf32>
    %211 = vector.broadcast %85 : f32 to vector<2x128xf32>
    %212 = arith.mulf %207, %211 : vector<2x128xf32>
    %213 = arith.addf %186, %212 : vector<2x128xf32>
    %214 = vector.broadcast %86 : f32 to vector<2x128xf32>
    %215 = arith.mulf %207, %214 : vector<2x128xf32>
    %216 = arith.addf %189, %215 : vector<2x128xf32>
    %217 = vector.broadcast %87 : f32 to vector<2x128xf32>
    %218 = arith.mulf %207, %217 : vector<2x128xf32>
    %219 = arith.addf %192, %218 : vector<2x128xf32>
    %220 = vector.broadcast %2 : f32 to vector<2x128xf32>
    %221 = arith.mulf %152, %220 : vector<2x128xf32>
    %222 = vector.broadcast %18 : f32 to vector<2x128xf32>
    %223 = arith.mulf %155, %222 : vector<2x128xf32>
    %224 = arith.addf %221, %223 : vector<2x128xf32>
    %225 = vector.broadcast %34 : f32 to vector<2x128xf32>
    %226 = arith.mulf %158, %225 : vector<2x128xf32>
    %227 = arith.addf %224, %226 : vector<2x128xf32>
    %228 = vector.broadcast %50 : f32 to vector<2x128xf32>
    %229 = arith.mulf %161, %228 : vector<2x128xf32>
    %230 = arith.addf %227, %229 : vector<2x128xf32>
    %231 = vector.broadcast %66 : f32 to vector<2x128xf32>
    %232 = arith.addf %230, %231 : vector<2x128xf32>
    %cst_273 = arith.constant 0.000000e+00 : f32
    %233 = vector.broadcast %cst_273 : f32 to vector<2x128xf32>
    %234 = arith.maximumf %232, %233 : vector<2x128xf32>
    %235 = vector.broadcast %88 : f32 to vector<2x128xf32>
    %236 = arith.mulf %234, %235 : vector<2x128xf32>
    %237 = arith.addf %210, %236 : vector<2x128xf32>
    %238 = vector.broadcast %89 : f32 to vector<2x128xf32>
    %239 = arith.mulf %234, %238 : vector<2x128xf32>
    %240 = arith.addf %213, %239 : vector<2x128xf32>
    %241 = vector.broadcast %90 : f32 to vector<2x128xf32>
    %242 = arith.mulf %234, %241 : vector<2x128xf32>
    %243 = arith.addf %216, %242 : vector<2x128xf32>
    %244 = vector.broadcast %91 : f32 to vector<2x128xf32>
    %245 = arith.mulf %234, %244 : vector<2x128xf32>
    %246 = arith.addf %219, %245 : vector<2x128xf32>
    %247 = vector.broadcast %3 : f32 to vector<2x128xf32>
    %248 = arith.mulf %152, %247 : vector<2x128xf32>
    %249 = vector.broadcast %19 : f32 to vector<2x128xf32>
    %250 = arith.mulf %155, %249 : vector<2x128xf32>
    %251 = arith.addf %248, %250 : vector<2x128xf32>
    %252 = vector.broadcast %35 : f32 to vector<2x128xf32>
    %253 = arith.mulf %158, %252 : vector<2x128xf32>
    %254 = arith.addf %251, %253 : vector<2x128xf32>
    %255 = vector.broadcast %51 : f32 to vector<2x128xf32>
    %256 = arith.mulf %161, %255 : vector<2x128xf32>
    %257 = arith.addf %254, %256 : vector<2x128xf32>
    %258 = vector.broadcast %67 : f32 to vector<2x128xf32>
    %259 = arith.addf %257, %258 : vector<2x128xf32>
    %cst_274 = arith.constant 0.000000e+00 : f32
    %260 = vector.broadcast %cst_274 : f32 to vector<2x128xf32>
    %261 = arith.maximumf %259, %260 : vector<2x128xf32>
    %262 = vector.broadcast %92 : f32 to vector<2x128xf32>
    %263 = arith.mulf %261, %262 : vector<2x128xf32>
    %264 = arith.addf %237, %263 : vector<2x128xf32>
    %265 = vector.broadcast %93 : f32 to vector<2x128xf32>
    %266 = arith.mulf %261, %265 : vector<2x128xf32>
    %267 = arith.addf %240, %266 : vector<2x128xf32>
    %268 = vector.broadcast %94 : f32 to vector<2x128xf32>
    %269 = arith.mulf %261, %268 : vector<2x128xf32>
    %270 = arith.addf %243, %269 : vector<2x128xf32>
    %271 = vector.broadcast %95 : f32 to vector<2x128xf32>
    %272 = arith.mulf %261, %271 : vector<2x128xf32>
    %273 = arith.addf %246, %272 : vector<2x128xf32>
    %274 = vector.broadcast %4 : f32 to vector<2x128xf32>
    %275 = arith.mulf %152, %274 : vector<2x128xf32>
    %276 = vector.broadcast %20 : f32 to vector<2x128xf32>
    %277 = arith.mulf %155, %276 : vector<2x128xf32>
    %278 = arith.addf %275, %277 : vector<2x128xf32>
    %279 = vector.broadcast %36 : f32 to vector<2x128xf32>
    %280 = arith.mulf %158, %279 : vector<2x128xf32>
    %281 = arith.addf %278, %280 : vector<2x128xf32>
    %282 = vector.broadcast %52 : f32 to vector<2x128xf32>
    %283 = arith.mulf %161, %282 : vector<2x128xf32>
    %284 = arith.addf %281, %283 : vector<2x128xf32>
    %285 = vector.broadcast %68 : f32 to vector<2x128xf32>
    %286 = arith.addf %284, %285 : vector<2x128xf32>
    %cst_275 = arith.constant 0.000000e+00 : f32
    %287 = vector.broadcast %cst_275 : f32 to vector<2x128xf32>
    %288 = arith.maximumf %286, %287 : vector<2x128xf32>
    %289 = vector.broadcast %96 : f32 to vector<2x128xf32>
    %290 = arith.mulf %288, %289 : vector<2x128xf32>
    %291 = arith.addf %264, %290 : vector<2x128xf32>
    %292 = vector.broadcast %97 : f32 to vector<2x128xf32>
    %293 = arith.mulf %288, %292 : vector<2x128xf32>
    %294 = arith.addf %267, %293 : vector<2x128xf32>
    %295 = vector.broadcast %98 : f32 to vector<2x128xf32>
    %296 = arith.mulf %288, %295 : vector<2x128xf32>
    %297 = arith.addf %270, %296 : vector<2x128xf32>
    %298 = vector.broadcast %99 : f32 to vector<2x128xf32>
    %299 = arith.mulf %288, %298 : vector<2x128xf32>
    %300 = arith.addf %273, %299 : vector<2x128xf32>
    %301 = vector.broadcast %5 : f32 to vector<2x128xf32>
    %302 = arith.mulf %152, %301 : vector<2x128xf32>
    %303 = vector.broadcast %21 : f32 to vector<2x128xf32>
    %304 = arith.mulf %155, %303 : vector<2x128xf32>
    %305 = arith.addf %302, %304 : vector<2x128xf32>
    %306 = vector.broadcast %37 : f32 to vector<2x128xf32>
    %307 = arith.mulf %158, %306 : vector<2x128xf32>
    %308 = arith.addf %305, %307 : vector<2x128xf32>
    %309 = vector.broadcast %53 : f32 to vector<2x128xf32>
    %310 = arith.mulf %161, %309 : vector<2x128xf32>
    %311 = arith.addf %308, %310 : vector<2x128xf32>
    %312 = vector.broadcast %69 : f32 to vector<2x128xf32>
    %313 = arith.addf %311, %312 : vector<2x128xf32>
    %cst_276 = arith.constant 0.000000e+00 : f32
    %314 = vector.broadcast %cst_276 : f32 to vector<2x128xf32>
    %315 = arith.maximumf %313, %314 : vector<2x128xf32>
    %316 = vector.broadcast %100 : f32 to vector<2x128xf32>
    %317 = arith.mulf %315, %316 : vector<2x128xf32>
    %318 = arith.addf %291, %317 : vector<2x128xf32>
    %319 = vector.broadcast %101 : f32 to vector<2x128xf32>
    %320 = arith.mulf %315, %319 : vector<2x128xf32>
    %321 = arith.addf %294, %320 : vector<2x128xf32>
    %322 = vector.broadcast %102 : f32 to vector<2x128xf32>
    %323 = arith.mulf %315, %322 : vector<2x128xf32>
    %324 = arith.addf %297, %323 : vector<2x128xf32>
    %325 = vector.broadcast %103 : f32 to vector<2x128xf32>
    %326 = arith.mulf %315, %325 : vector<2x128xf32>
    %327 = arith.addf %300, %326 : vector<2x128xf32>
    %328 = vector.broadcast %6 : f32 to vector<2x128xf32>
    %329 = arith.mulf %152, %328 : vector<2x128xf32>
    %330 = vector.broadcast %22 : f32 to vector<2x128xf32>
    %331 = arith.mulf %155, %330 : vector<2x128xf32>
    %332 = arith.addf %329, %331 : vector<2x128xf32>
    %333 = vector.broadcast %38 : f32 to vector<2x128xf32>
    %334 = arith.mulf %158, %333 : vector<2x128xf32>
    %335 = arith.addf %332, %334 : vector<2x128xf32>
    %336 = vector.broadcast %54 : f32 to vector<2x128xf32>
    %337 = arith.mulf %161, %336 : vector<2x128xf32>
    %338 = arith.addf %335, %337 : vector<2x128xf32>
    %339 = vector.broadcast %70 : f32 to vector<2x128xf32>
    %340 = arith.addf %338, %339 : vector<2x128xf32>
    %cst_277 = arith.constant 0.000000e+00 : f32
    %341 = vector.broadcast %cst_277 : f32 to vector<2x128xf32>
    %342 = arith.maximumf %340, %341 : vector<2x128xf32>
    %343 = vector.broadcast %104 : f32 to vector<2x128xf32>
    %344 = arith.mulf %342, %343 : vector<2x128xf32>
    %345 = arith.addf %318, %344 : vector<2x128xf32>
    %346 = vector.broadcast %105 : f32 to vector<2x128xf32>
    %347 = arith.mulf %342, %346 : vector<2x128xf32>
    %348 = arith.addf %321, %347 : vector<2x128xf32>
    %349 = vector.broadcast %106 : f32 to vector<2x128xf32>
    %350 = arith.mulf %342, %349 : vector<2x128xf32>
    %351 = arith.addf %324, %350 : vector<2x128xf32>
    %352 = vector.broadcast %107 : f32 to vector<2x128xf32>
    %353 = arith.mulf %342, %352 : vector<2x128xf32>
    %354 = arith.addf %327, %353 : vector<2x128xf32>
    %355 = vector.broadcast %7 : f32 to vector<2x128xf32>
    %356 = arith.mulf %152, %355 : vector<2x128xf32>
    %357 = vector.broadcast %23 : f32 to vector<2x128xf32>
    %358 = arith.mulf %155, %357 : vector<2x128xf32>
    %359 = arith.addf %356, %358 : vector<2x128xf32>
    %360 = vector.broadcast %39 : f32 to vector<2x128xf32>
    %361 = arith.mulf %158, %360 : vector<2x128xf32>
    %362 = arith.addf %359, %361 : vector<2x128xf32>
    %363 = vector.broadcast %55 : f32 to vector<2x128xf32>
    %364 = arith.mulf %161, %363 : vector<2x128xf32>
    %365 = arith.addf %362, %364 : vector<2x128xf32>
    %366 = vector.broadcast %71 : f32 to vector<2x128xf32>
    %367 = arith.addf %365, %366 : vector<2x128xf32>
    %cst_278 = arith.constant 0.000000e+00 : f32
    %368 = vector.broadcast %cst_278 : f32 to vector<2x128xf32>
    %369 = arith.maximumf %367, %368 : vector<2x128xf32>
    %370 = vector.broadcast %108 : f32 to vector<2x128xf32>
    %371 = arith.mulf %369, %370 : vector<2x128xf32>
    %372 = arith.addf %345, %371 : vector<2x128xf32>
    %373 = vector.broadcast %109 : f32 to vector<2x128xf32>
    %374 = arith.mulf %369, %373 : vector<2x128xf32>
    %375 = arith.addf %348, %374 : vector<2x128xf32>
    %376 = vector.broadcast %110 : f32 to vector<2x128xf32>
    %377 = arith.mulf %369, %376 : vector<2x128xf32>
    %378 = arith.addf %351, %377 : vector<2x128xf32>
    %379 = vector.broadcast %111 : f32 to vector<2x128xf32>
    %380 = arith.mulf %369, %379 : vector<2x128xf32>
    %381 = arith.addf %354, %380 : vector<2x128xf32>
    %382 = vector.broadcast %8 : f32 to vector<2x128xf32>
    %383 = arith.mulf %152, %382 : vector<2x128xf32>
    %384 = vector.broadcast %24 : f32 to vector<2x128xf32>
    %385 = arith.mulf %155, %384 : vector<2x128xf32>
    %386 = arith.addf %383, %385 : vector<2x128xf32>
    %387 = vector.broadcast %40 : f32 to vector<2x128xf32>
    %388 = arith.mulf %158, %387 : vector<2x128xf32>
    %389 = arith.addf %386, %388 : vector<2x128xf32>
    %390 = vector.broadcast %56 : f32 to vector<2x128xf32>
    %391 = arith.mulf %161, %390 : vector<2x128xf32>
    %392 = arith.addf %389, %391 : vector<2x128xf32>
    %393 = vector.broadcast %72 : f32 to vector<2x128xf32>
    %394 = arith.addf %392, %393 : vector<2x128xf32>
    %cst_279 = arith.constant 0.000000e+00 : f32
    %395 = vector.broadcast %cst_279 : f32 to vector<2x128xf32>
    %396 = arith.maximumf %394, %395 : vector<2x128xf32>
    %397 = vector.broadcast %112 : f32 to vector<2x128xf32>
    %398 = arith.mulf %396, %397 : vector<2x128xf32>
    %399 = arith.addf %372, %398 : vector<2x128xf32>
    %400 = vector.broadcast %113 : f32 to vector<2x128xf32>
    %401 = arith.mulf %396, %400 : vector<2x128xf32>
    %402 = arith.addf %375, %401 : vector<2x128xf32>
    %403 = vector.broadcast %114 : f32 to vector<2x128xf32>
    %404 = arith.mulf %396, %403 : vector<2x128xf32>
    %405 = arith.addf %378, %404 : vector<2x128xf32>
    %406 = vector.broadcast %115 : f32 to vector<2x128xf32>
    %407 = arith.mulf %396, %406 : vector<2x128xf32>
    %408 = arith.addf %381, %407 : vector<2x128xf32>
    %409 = vector.broadcast %9 : f32 to vector<2x128xf32>
    %410 = arith.mulf %152, %409 : vector<2x128xf32>
    %411 = vector.broadcast %25 : f32 to vector<2x128xf32>
    %412 = arith.mulf %155, %411 : vector<2x128xf32>
    %413 = arith.addf %410, %412 : vector<2x128xf32>
    %414 = vector.broadcast %41 : f32 to vector<2x128xf32>
    %415 = arith.mulf %158, %414 : vector<2x128xf32>
    %416 = arith.addf %413, %415 : vector<2x128xf32>
    %417 = vector.broadcast %57 : f32 to vector<2x128xf32>
    %418 = arith.mulf %161, %417 : vector<2x128xf32>
    %419 = arith.addf %416, %418 : vector<2x128xf32>
    %420 = vector.broadcast %73 : f32 to vector<2x128xf32>
    %421 = arith.addf %419, %420 : vector<2x128xf32>
    %cst_280 = arith.constant 0.000000e+00 : f32
    %422 = vector.broadcast %cst_280 : f32 to vector<2x128xf32>
    %423 = arith.maximumf %421, %422 : vector<2x128xf32>
    %424 = vector.broadcast %116 : f32 to vector<2x128xf32>
    %425 = arith.mulf %423, %424 : vector<2x128xf32>
    %426 = arith.addf %399, %425 : vector<2x128xf32>
    %427 = vector.broadcast %117 : f32 to vector<2x128xf32>
    %428 = arith.mulf %423, %427 : vector<2x128xf32>
    %429 = arith.addf %402, %428 : vector<2x128xf32>
    %430 = vector.broadcast %118 : f32 to vector<2x128xf32>
    %431 = arith.mulf %423, %430 : vector<2x128xf32>
    %432 = arith.addf %405, %431 : vector<2x128xf32>
    %433 = vector.broadcast %119 : f32 to vector<2x128xf32>
    %434 = arith.mulf %423, %433 : vector<2x128xf32>
    %435 = arith.addf %408, %434 : vector<2x128xf32>
    %436 = vector.broadcast %10 : f32 to vector<2x128xf32>
    %437 = arith.mulf %152, %436 : vector<2x128xf32>
    %438 = vector.broadcast %26 : f32 to vector<2x128xf32>
    %439 = arith.mulf %155, %438 : vector<2x128xf32>
    %440 = arith.addf %437, %439 : vector<2x128xf32>
    %441 = vector.broadcast %42 : f32 to vector<2x128xf32>
    %442 = arith.mulf %158, %441 : vector<2x128xf32>
    %443 = arith.addf %440, %442 : vector<2x128xf32>
    %444 = vector.broadcast %58 : f32 to vector<2x128xf32>
    %445 = arith.mulf %161, %444 : vector<2x128xf32>
    %446 = arith.addf %443, %445 : vector<2x128xf32>
    %447 = vector.broadcast %74 : f32 to vector<2x128xf32>
    %448 = arith.addf %446, %447 : vector<2x128xf32>
    %cst_281 = arith.constant 0.000000e+00 : f32
    %449 = vector.broadcast %cst_281 : f32 to vector<2x128xf32>
    %450 = arith.maximumf %448, %449 : vector<2x128xf32>
    %451 = vector.broadcast %120 : f32 to vector<2x128xf32>
    %452 = arith.mulf %450, %451 : vector<2x128xf32>
    %453 = arith.addf %426, %452 : vector<2x128xf32>
    %454 = vector.broadcast %121 : f32 to vector<2x128xf32>
    %455 = arith.mulf %450, %454 : vector<2x128xf32>
    %456 = arith.addf %429, %455 : vector<2x128xf32>
    %457 = vector.broadcast %122 : f32 to vector<2x128xf32>
    %458 = arith.mulf %450, %457 : vector<2x128xf32>
    %459 = arith.addf %432, %458 : vector<2x128xf32>
    %460 = vector.broadcast %123 : f32 to vector<2x128xf32>
    %461 = arith.mulf %450, %460 : vector<2x128xf32>
    %462 = arith.addf %435, %461 : vector<2x128xf32>
    %463 = vector.broadcast %11 : f32 to vector<2x128xf32>
    %464 = arith.mulf %152, %463 : vector<2x128xf32>
    %465 = vector.broadcast %27 : f32 to vector<2x128xf32>
    %466 = arith.mulf %155, %465 : vector<2x128xf32>
    %467 = arith.addf %464, %466 : vector<2x128xf32>
    %468 = vector.broadcast %43 : f32 to vector<2x128xf32>
    %469 = arith.mulf %158, %468 : vector<2x128xf32>
    %470 = arith.addf %467, %469 : vector<2x128xf32>
    %471 = vector.broadcast %59 : f32 to vector<2x128xf32>
    %472 = arith.mulf %161, %471 : vector<2x128xf32>
    %473 = arith.addf %470, %472 : vector<2x128xf32>
    %474 = vector.broadcast %75 : f32 to vector<2x128xf32>
    %475 = arith.addf %473, %474 : vector<2x128xf32>
    %cst_282 = arith.constant 0.000000e+00 : f32
    %476 = vector.broadcast %cst_282 : f32 to vector<2x128xf32>
    %477 = arith.maximumf %475, %476 : vector<2x128xf32>
    %478 = vector.broadcast %124 : f32 to vector<2x128xf32>
    %479 = arith.mulf %477, %478 : vector<2x128xf32>
    %480 = arith.addf %453, %479 : vector<2x128xf32>
    %481 = vector.broadcast %125 : f32 to vector<2x128xf32>
    %482 = arith.mulf %477, %481 : vector<2x128xf32>
    %483 = arith.addf %456, %482 : vector<2x128xf32>
    %484 = vector.broadcast %126 : f32 to vector<2x128xf32>
    %485 = arith.mulf %477, %484 : vector<2x128xf32>
    %486 = arith.addf %459, %485 : vector<2x128xf32>
    %487 = vector.broadcast %127 : f32 to vector<2x128xf32>
    %488 = arith.mulf %477, %487 : vector<2x128xf32>
    %489 = arith.addf %462, %488 : vector<2x128xf32>
    %490 = vector.broadcast %12 : f32 to vector<2x128xf32>
    %491 = arith.mulf %152, %490 : vector<2x128xf32>
    %492 = vector.broadcast %28 : f32 to vector<2x128xf32>
    %493 = arith.mulf %155, %492 : vector<2x128xf32>
    %494 = arith.addf %491, %493 : vector<2x128xf32>
    %495 = vector.broadcast %44 : f32 to vector<2x128xf32>
    %496 = arith.mulf %158, %495 : vector<2x128xf32>
    %497 = arith.addf %494, %496 : vector<2x128xf32>
    %498 = vector.broadcast %60 : f32 to vector<2x128xf32>
    %499 = arith.mulf %161, %498 : vector<2x128xf32>
    %500 = arith.addf %497, %499 : vector<2x128xf32>
    %501 = vector.broadcast %76 : f32 to vector<2x128xf32>
    %502 = arith.addf %500, %501 : vector<2x128xf32>
    %cst_283 = arith.constant 0.000000e+00 : f32
    %503 = vector.broadcast %cst_283 : f32 to vector<2x128xf32>
    %504 = arith.maximumf %502, %503 : vector<2x128xf32>
    %505 = vector.broadcast %128 : f32 to vector<2x128xf32>
    %506 = arith.mulf %504, %505 : vector<2x128xf32>
    %507 = arith.addf %480, %506 : vector<2x128xf32>
    %508 = vector.broadcast %129 : f32 to vector<2x128xf32>
    %509 = arith.mulf %504, %508 : vector<2x128xf32>
    %510 = arith.addf %483, %509 : vector<2x128xf32>
    %511 = vector.broadcast %130 : f32 to vector<2x128xf32>
    %512 = arith.mulf %504, %511 : vector<2x128xf32>
    %513 = arith.addf %486, %512 : vector<2x128xf32>
    %514 = vector.broadcast %131 : f32 to vector<2x128xf32>
    %515 = arith.mulf %504, %514 : vector<2x128xf32>
    %516 = arith.addf %489, %515 : vector<2x128xf32>
    %517 = vector.broadcast %13 : f32 to vector<2x128xf32>
    %518 = arith.mulf %152, %517 : vector<2x128xf32>
    %519 = vector.broadcast %29 : f32 to vector<2x128xf32>
    %520 = arith.mulf %155, %519 : vector<2x128xf32>
    %521 = arith.addf %518, %520 : vector<2x128xf32>
    %522 = vector.broadcast %45 : f32 to vector<2x128xf32>
    %523 = arith.mulf %158, %522 : vector<2x128xf32>
    %524 = arith.addf %521, %523 : vector<2x128xf32>
    %525 = vector.broadcast %61 : f32 to vector<2x128xf32>
    %526 = arith.mulf %161, %525 : vector<2x128xf32>
    %527 = arith.addf %524, %526 : vector<2x128xf32>
    %528 = vector.broadcast %77 : f32 to vector<2x128xf32>
    %529 = arith.addf %527, %528 : vector<2x128xf32>
    %cst_284 = arith.constant 0.000000e+00 : f32
    %530 = vector.broadcast %cst_284 : f32 to vector<2x128xf32>
    %531 = arith.maximumf %529, %530 : vector<2x128xf32>
    %532 = vector.broadcast %132 : f32 to vector<2x128xf32>
    %533 = arith.mulf %531, %532 : vector<2x128xf32>
    %534 = arith.addf %507, %533 : vector<2x128xf32>
    %535 = vector.broadcast %133 : f32 to vector<2x128xf32>
    %536 = arith.mulf %531, %535 : vector<2x128xf32>
    %537 = arith.addf %510, %536 : vector<2x128xf32>
    %538 = vector.broadcast %134 : f32 to vector<2x128xf32>
    %539 = arith.mulf %531, %538 : vector<2x128xf32>
    %540 = arith.addf %513, %539 : vector<2x128xf32>
    %541 = vector.broadcast %135 : f32 to vector<2x128xf32>
    %542 = arith.mulf %531, %541 : vector<2x128xf32>
    %543 = arith.addf %516, %542 : vector<2x128xf32>
    %544 = vector.broadcast %14 : f32 to vector<2x128xf32>
    %545 = arith.mulf %152, %544 : vector<2x128xf32>
    %546 = vector.broadcast %30 : f32 to vector<2x128xf32>
    %547 = arith.mulf %155, %546 : vector<2x128xf32>
    %548 = arith.addf %545, %547 : vector<2x128xf32>
    %549 = vector.broadcast %46 : f32 to vector<2x128xf32>
    %550 = arith.mulf %158, %549 : vector<2x128xf32>
    %551 = arith.addf %548, %550 : vector<2x128xf32>
    %552 = vector.broadcast %62 : f32 to vector<2x128xf32>
    %553 = arith.mulf %161, %552 : vector<2x128xf32>
    %554 = arith.addf %551, %553 : vector<2x128xf32>
    %555 = vector.broadcast %78 : f32 to vector<2x128xf32>
    %556 = arith.addf %554, %555 : vector<2x128xf32>
    %cst_285 = arith.constant 0.000000e+00 : f32
    %557 = vector.broadcast %cst_285 : f32 to vector<2x128xf32>
    %558 = arith.maximumf %556, %557 : vector<2x128xf32>
    %559 = vector.broadcast %136 : f32 to vector<2x128xf32>
    %560 = arith.mulf %558, %559 : vector<2x128xf32>
    %561 = arith.addf %534, %560 : vector<2x128xf32>
    %562 = vector.broadcast %137 : f32 to vector<2x128xf32>
    %563 = arith.mulf %558, %562 : vector<2x128xf32>
    %564 = arith.addf %537, %563 : vector<2x128xf32>
    %565 = vector.broadcast %138 : f32 to vector<2x128xf32>
    %566 = arith.mulf %558, %565 : vector<2x128xf32>
    %567 = arith.addf %540, %566 : vector<2x128xf32>
    %568 = vector.broadcast %139 : f32 to vector<2x128xf32>
    %569 = arith.mulf %558, %568 : vector<2x128xf32>
    %570 = arith.addf %543, %569 : vector<2x128xf32>
    %571 = vector.broadcast %15 : f32 to vector<2x128xf32>
    %572 = arith.mulf %152, %571 : vector<2x128xf32>
    %573 = vector.broadcast %31 : f32 to vector<2x128xf32>
    %574 = arith.mulf %155, %573 : vector<2x128xf32>
    %575 = arith.addf %572, %574 : vector<2x128xf32>
    %576 = vector.broadcast %47 : f32 to vector<2x128xf32>
    %577 = arith.mulf %158, %576 : vector<2x128xf32>
    %578 = arith.addf %575, %577 : vector<2x128xf32>
    %579 = vector.broadcast %63 : f32 to vector<2x128xf32>
    %580 = arith.mulf %161, %579 : vector<2x128xf32>
    %581 = arith.addf %578, %580 : vector<2x128xf32>
    %582 = vector.broadcast %79 : f32 to vector<2x128xf32>
    %583 = arith.addf %581, %582 : vector<2x128xf32>
    %cst_286 = arith.constant 0.000000e+00 : f32
    %584 = vector.broadcast %cst_286 : f32 to vector<2x128xf32>
    %585 = arith.maximumf %583, %584 : vector<2x128xf32>
    %586 = vector.broadcast %140 : f32 to vector<2x128xf32>
    %587 = arith.mulf %585, %586 : vector<2x128xf32>
    %588 = arith.addf %561, %587 : vector<2x128xf32>
    %589 = vector.broadcast %141 : f32 to vector<2x128xf32>
    %590 = arith.mulf %585, %589 : vector<2x128xf32>
    %591 = arith.addf %564, %590 : vector<2x128xf32>
    %592 = vector.broadcast %142 : f32 to vector<2x128xf32>
    %593 = arith.mulf %585, %592 : vector<2x128xf32>
    %594 = arith.addf %567, %593 : vector<2x128xf32>
    %595 = vector.broadcast %143 : f32 to vector<2x128xf32>
    %596 = arith.mulf %585, %595 : vector<2x128xf32>
    %597 = arith.addf %570, %596 : vector<2x128xf32>
    %c0_287 = arith.constant 0 : index
    %c0_288 = arith.constant 0 : index
    %598 = arith.index_cast %149 : i32 to index
    %c0_289 = arith.constant 0 : index
    %599 = vector.load %arg7[%c0_287, %c0_288, %598, %c0_289] : memref<1x4x2x128xf32, #tpu.memory_space<vmem>>, vector<1x1x2x128xf32>
    %600 = vector.shape_cast %599 : vector<1x1x2x128xf32> to vector<2x128xf32>
    %601 = vector.shape_cast %588 : vector<2x128xf32> to vector<1x1x2x128xf32>
    tpu.vector_store %arg7[%c0_287, %c0_288, %598, %c0_289], %601 {strides = array<i32>} : memref<1x4x2x128xf32, #tpu.memory_space<vmem>>, vector<1x1x2x128xf32>,
    %c0_290 = arith.constant 0 : index
    %c1_291 = arith.constant 1 : index
    %602 = arith.index_cast %149 : i32 to index
    %c0_292 = arith.constant 0 : index
    %603 = vector.load %arg7[%c0_290, %c1_291, %602, %c0_292] : memref<1x4x2x128xf32, #tpu.memory_space<vmem>>, vector<1x1x2x128xf32>
    %604 = vector.shape_cast %603 : vector<1x1x2x128xf32> to vector<2x128xf32>
    %605 = vector.shape_cast %591 : vector<2x128xf32> to vector<1x1x2x128xf32>
    tpu.vector_store %arg7[%c0_290, %c1_291, %602, %c0_292], %605 {strides = array<i32>} : memref<1x4x2x128xf32, #tpu.memory_space<vmem>>, vector<1x1x2x128xf32>,
    %c0_293 = arith.constant 0 : index
    %c2_294 = arith.constant 2 : index
    %606 = arith.index_cast %149 : i32 to index
    %c0_295 = arith.constant 0 : index
    %607 = vector.load %arg7[%c0_293, %c2_294, %606, %c0_295] : memref<1x4x2x128xf32, #tpu.memory_space<vmem>>, vector<1x1x2x128xf32>
    %608 = vector.shape_cast %607 : vector<1x1x2x128xf32> to vector<2x128xf32>
    %609 = vector.shape_cast %594 : vector<2x128xf32> to vector<1x1x2x128xf32>
    tpu.vector_store %arg7[%c0_293, %c2_294, %606, %c0_295], %609 {strides = array<i32>} : memref<1x4x2x128xf32, #tpu.memory_space<vmem>>, vector<1x1x2x128xf32>,
    %c0_296 = arith.constant 0 : index
    %c3_297 = arith.constant 3 : index
    %610 = arith.index_cast %149 : i32 to index
    %c0_298 = arith.constant 0 : index
    %611 = vector.load %arg7[%c0_296, %c3_297, %610, %c0_298] : memref<1x4x2x128xf32, #tpu.memory_space<vmem>>, vector<1x1x2x128xf32>
    %612 = vector.shape_cast %611 : vector<1x1x2x128xf32> to vector<2x128xf32>
    %613 = vector.shape_cast %597 : vector<2x128xf32> to vector<1x1x2x128xf32>
    tpu.vector_store %arg7[%c0_296, %c3_297, %610, %c0_298], %613 {strides = array<i32>} : memref<1x4x2x128xf32, #tpu.memory_space<vmem>>, vector<1x1x2x128xf32>,
    %c1_i32 = arith.constant 1 : i32
    return
  }
  func.func @transform_0(%arg0: i32, %arg1: i32) -> (i32, i32, i32, i32) {
    %c0_i32 = arith.constant 0 : i32
    %c0_i32_0 = arith.constant 0 : i32
    %c0_i32_1 = arith.constant 0 : i32
    return %arg0, %c0_i32, %arg1, %c0_i32_0 : i32, i32, i32, i32
  }
  func.func @transform_1(%arg0: i32, %arg1: i32) -> (i32, i32) {
    %c0_i32 = arith.constant 0 : i32
    %c0_i32_0 = arith.constant 0 : i32
    %c0_i32_1 = arith.constant 0 : i32
    return %c0_i32, %c0_i32_0 : i32, i32
  }
  func.func @transform_2(%arg0: i32, %arg1: i32) -> i32 {
    %c0_i32 = arith.constant 0 : i32
    %c0_i32_0 = arith.constant 0 : i32
    return %c0_i32 : i32
  }
  func.func @transform_3(%arg0: i32, %arg1: i32) -> (i32, i32) {
    %c0_i32 = arith.constant 0 : i32
    %c0_i32_0 = arith.constant 0 : i32
    %c0_i32_1 = arith.constant 0 : i32
    return %c0_i32, %c0_i32_0 : i32, i32
  }
  func.func @transform_4(%arg0: i32, %arg1: i32) -> i32 {
    %c0_i32 = arith.constant 0 : i32
    %c0_i32_0 = arith.constant 0 : i32
    return %c0_i32 : i32
  }
  func.func @transform_5(%arg0: i32, %arg1: i32) -> (i32, i32, i32, i32) {
    %c0_i32 = arith.constant 0 : i32
    %c0_i32_0 = arith.constant 0 : i32
    %c0_i32_1 = arith.constant 0 : i32
    return %arg0, %c0_i32, %arg1, %c0_i32_0 : i32, i32, i32, i32
  }
}

</mosaic_0001>

<bundles_post_ra>
// kernel: tpu_custom_call.1
= control target key start
LH: loop header
LB: loop body
LE: loop exit
PB: predicated region body
PF: predicated region fallthrough
CT: control target
= control target key end

     0   :  { %s2433_s0 = inlined_call_operand.vmem [shape: f32[2,4,2,128], index: 0, kind: input, shape index: {}]   ;;  %s2434_s1 = inlined_call_operand.vmem [shape: f32[4,16], index: 1, kind: input, shape index: {}]   ;;  %s2435_s2 = inlined_call_operand.vmem [shape: f32[16], index: 2, kind: input, shape index: {}]   ;;  %s2436_s3 = inlined_call_operand.vmem [shape: f32[16,4], index: 3, kind: input, shape index: {}]   ;;  %s2437_s4 = inlined_call_operand.vmem [shape: f32[4], index: 4, kind: input, shape index: {}]   ;;  %s2438_s5 = inlined_call_operand.hbm [shape: f32[2,4,2,128], index: 5, kind: output, shape index: {}]  }
   0x1   :  { %2456 = sst [smem:[#allocation53_spill]] %s2433_s0 }
   0x2   :  { %2457 = sst [smem:[#allocation54_spill]] %s2434_s1 }
   0x3   :  { %2458 = sst [smem:[#allocation55_spill]] %s2435_s2 }
   0x4   :  { %2459 = sst [smem:[#allocation56_spill]] %s2436_s3 }
   0x5   :  { %2460 = sst [smem:[#allocation57_spill]] %s2437_s4 }
   0x6   :  { %2461 = sst [smem:[#allocation58_spill]] %s2438_s5 }
   0x7   :  { %10 = vsyncpa [#allocation4], 0 }
   0x8   :  { %11 = vsyncpa [#allocation6], 0 }
   0x9   :  { %12 = vsyncpa [#allocation9], 0 }
   0xa   :  { %13 = vsyncpa [#allocation3], 0 }
   0xb   :  { %15 = vsyncpa [#allocation3 + $0x1], 0  ;;  %s1489_s18 = smov 0   ;;  %s1491_s19 = smov 0  }
   0xc   :  { %s1493_s20 = smov 0   ;;  %s1495_s21 = smov 0  }
   0xd   :  { %s1497_s22 = smov 0   ;;  %s1499_s23 = smov 0  }
   0xe LB: > { %2462 = sst [smem:[#allocation15_spill]] %s1428_s18  ;;  %s1027_s24 = sadd.s32 4294967295, %s1448_s23   ;;  %s1448_s23 = sphi %s1499_s23, %s21_s23   ;;  %s1444_s22 = sphi %s1497_s22, %s2587_s22   ;;  %s1440_s21 = sphi %s1495_s21, %s2586_s21   ;;  %s1436_s20 = sphi %s1493_s20, %s2585_s20   ;;  %s1432_s19 = sphi %s1491_s19, %s2584_s19   ;;  %s1428_s18 = sphi %s1489_s18, %s2583_s18  }
   0xf   : > { %2463 = sst [smem:[#allocation16_spill]] %s1432_s19  ;;  %s1028_s25 = sadd.s32 4294967294, %s1448_s23  }
  0x10   : > { %2464 = sst [smem:[#allocation17_spill]] %s1436_s20  ;;  %s33_s26 = sadd.s32 1, %s1444_s22 }
  0x11   : > { %2465 = sst [smem:[#allocation18_spill]] %s1440_s21  ;;  %s154_s27 = sadd.s32 1, %s1436_s20 }
  0x12   : > { %2466 = sst [smem:[#allocation19_spill]] %s1444_s22  ;;  %p35_p0 = scmp.ge.s32.totalorder %s33_s26, 2 }
  0x13   : > { %2467 = sst [smem:[#allocation20_spill]] %s1448_s23  ;;  %p164_p1 = scmp.ne.s32.totalorder %s1436_s20, %s1432_s19 }
  0x14   : > { %p165_p2 = scmp.eq.s32.totalorder %s1027_s24, 1  ;;  %p170_p3 = scmp.ne.s32.totalorder %s1432_s19, %s1428_s18 }
  0x15   : > { %s2589_s26 = smov (%p35_p0, %s33_s26), 0  ;;  %p171_p5 = scmp.eq.s32.totalorder %s1028_s25, 1 }
  0x16   : > { %2468 = sst [smem:[#allocation21_spill]] %s2589_s26  ;;  %p1529_p4 = por %p165_p2, %p164_p1 }
  0x17   : > { %s149_s29 = ssub.s32 %s1444_s22, %s2589_s26  ;;  %p1029_p6 = scmp.ge.s32.totalorder %s1448_s23, 1 }
  0x18   : > { %s2469_s28 = scalar_select %p1529_p4, 1, 0 }
  0x19   : > { %p152_p7 = scmp.eq.s32.totalorder %s149_s29, 0  ;;  %p1536_p8 = por %p171_p5, %p170_p3 }
  0x1a   : > { %2470 = sst [smem:[#allocation22_spill]] %s2469_s28  ;;  %p178_p9 = scmp.lt.s32.totalorder %s1448_s23, 3 }
  0x1b   : > { %s2471_s30 = scalar_select %p1536_p8, 1, 0 }
  0x1c   : > { %s1542_s6 = scalar_select %p152_p7, %s1436_s20, %s154_s27  }
  0x1d   : > { %2472 = sst [smem:[#allocation23_spill]] %s2471_s30  ;;  %p1544_p10 = pnand %p1029_p6, %p178_p9 }
  0x1e   : > { %2473 = sst [smem:[#allocation24_spill]] %s1542_s6  ;;  %p1548_p11 = scmp.eq.s32.totalorder %s1027_s24, 0 }
  0x1f   : > { %s2474_s7 = scalar_select %p1544_p10, 1, 0 }
  0x20   : > { %s2475_s8 = scalar_select %p1548_p11, 1, 0 }
  0x21   : > { %s2476_s2 = sld [smem:[#allocation55_spill]]  ;;  %p1218_p12 = pneg %p1544_p10 }
  0x22   : > { %s2477_s1 = sld [smem:[#allocation54_spill]] }
  0x23   : > { %p1562_p13 = pnand %p1548_p11, %p1218_p12  ;;  %s2479_s3 = sld [smem:[#allocation56_spill]] }
  0x25   : > { %p1302_p1 = pneg %p1562_p13 }
  0x27   : > { %s202_s11 = sshll.u32 %s2476_s2, 4  ;;  %s203_s11 = int_to_ptr.vmem [resolvable:$true] %s202_s11 }
  0x28   : > { %s191_s14 = sshll.u32 %s2477_s1, 4  ;;  %s1300_s25 = scalar_lea.vmem %s203_s11, 16  ;;  %s192_s14 = int_to_ptr.vmem [resolvable:$true] %s191_s14 }
  0x29   : > { %s212_s24 = sshll.u32 %s2479_s3, 4  ;;  %p1301_p0 = scmp.ne.s32.totalorder %s203_s11, %s1300_s25  ;;  %s213_s24 = int_to_ptr.vmem [resolvable:$true] %s212_s24 }
  0x2a   : > { %p1308_p5 = scmp.lt.s32.totalorder %s203_s11, %s203_s11  ;;  %p1309_p6 = scmp.lt.s32.totalorder %s1300_s25, %s1300_s25 }
  0x2b   : > { %p1303_p2 = pnand %p1302_p1, %p1301_p0 }
  0x2c   : > { %p1310_p7 = por %p1309_p6, %p1308_p5 }
  0x2d   : > { %p1304_p3 = pneg %p1303_p2 }
  0x2f   : > { %p1311_p9 = pnand %p1310_p7, %p1304_p3 }
  0x31   : > { %1314 = shalt.err (!%p1311_p9)
}
  0x32   : > { %s1450_s27 = smov [#allocation5]   ;;  %s1315_s29 = scalar_lea.vmem %s192_s14, 64 }
  0x33   : > { %1224 = dma.vmem_to_smem (!%p1562_p13), %s203_s11, 16, %s1450_s27, [#allocation6]  }
  0x34   : > { %p1316_p12 = scmp.ne.s32.totalorder %s192_s14, %s1315_s29  ;;  %p1323_p11 = scmp.lt.s32.totalorder %s192_s14, %s192_s14 }
  0x35   : > { %p1324_p10 = scmp.lt.s32.totalorder %s1315_s29, %s1315_s29 }
  0x36   : > { %p1318_p8 = pnand %p1316_p12, %p1302_p1 }
  0x37   : > { %p1325_p0 = por %p1324_p10, %p1323_p11 }
  0x38   : > { %p1319_p4 = pneg %p1318_p8 }
  0x3a   : > { %p1326_p2 = pnand %p1325_p0, %p1319_p4 }
  0x3c   : > { %1329 = shalt.err (!%p1326_p2)
}
  0x3d   : > { %s1451_s9 = smov [#allocation2]   ;;  %s1330_s10 = scalar_lea.vmem %s213_s24, 256 }
  0x3e   : > { %1221 = dma.vmem_to_smem (!%p1562_p13), %s192_s14, 64, %s1451_s9, [#allocation4]  }
  0x3f   : > { %p1331_p3 = scmp.ne.s32.totalorder %s213_s24, %s1330_s10  ;;  %p1338_p7 = scmp.lt.s32.totalorder %s213_s24, %s213_s24 }
  0x40   : > { %p1339_p9 = scmp.lt.s32.totalorder %s1330_s10, %s1330_s10 }
  0x41   : > { %p1333_p5 = pnand %p1331_p3, %p1302_p1 }
  0x42   : > { %p1340_p8 = por %p1339_p9, %p1338_p7 }
  0x43   : > { %p1334_p6 = pneg %p1333_p5 }
  0x45   : > { %p1341_p12 = pnand %p1340_p8, %p1334_p6 }
  0x47   : > { %1344 = shalt.err (!%p1341_p12)
}
  0x48   : > { %s1452_s11 = smov [#allocation7]   ;;  %s1453_s12 = smov 128  }
  0x49   : > { %s1454_s13 = smov 8   ;;  %s2480_s4 = sld [smem:[#allocation57_spill]] }
  0x4a   : > { %1227 = dma.vmem_to_smem (!%p1562_p13), %s213_s24, 256, %s1452_s11, [#allocation6], %s1453_s12, %s1453_s12, %s1454_s13  }
  0x4f   : > { %s226_s17 = sshll.u32 %s2480_s4, 4  ;;  %s227_s17 = int_to_ptr.vmem [resolvable:$true] %s226_s17 }
  0x50   : > { %s1345_s25 = scalar_lea.vmem %s227_s17, 16  ;;  %p1353_p0 = scmp.lt.s32.totalorder %s227_s17, %s227_s17 }
  0x51   : > { %p1346_p4 = scmp.ne.s32.totalorder %s227_s17, %s1345_s25  ;;  %p1354_p2 = scmp.lt.s32.totalorder %s1345_s25, %s1345_s25 }
  0x53   : > { %p1348_p10 = pnand %p1346_p4, %p1302_p1  ;;  %p1355_p3 = por %p1354_p2, %p1353_p0 }
  0x55   : > { %p1349_p11 = pneg %p1348_p10 }
  0x57   : > { %p1356_p5 = pnand %p1355_p3, %p1349_p11 }
  0x59   : > { %1359 = shalt.err (!%p1356_p5)
}
  0x5a   : > { %s1455_s27 = smov [#allocation8]   ;;  %p2481_p6 = scmp.ne.s32.totalorder %s2474_s7, 0 }
  0x5b   : > { %1230 = dma.vmem_to_smem (!%p1562_p13), %s227_s17, 16, %s1455_s27, [#allocation9]  }
  0x5c   : > { %250 = sbr.rel (%p2481_p6) target bundleno = 376 (0x178), region = 40 }
  0x61   : > { %p2482_p7 = scmp.ne.s32.totalorder %s2475_s8, 0 }
  0x63   : > { %1411 = dma.done.wait (%p2482_p7), [#allocation4], 64  }
  0x64   : > { %1413 = vsyncadd (%p2482_p7), [#allocation4], 4294967232 }
  0x65   : > { %1415 = dma.done.wait (%p2482_p7), [#allocation6], 272  }
  0x66   : > { %1417 = vsyncadd (%p2482_p7), [#allocation6], 4294967024 }
  0x67   : > { %1419 = dma.done.wait (%p2482_p7), [#allocation9], 16  }
  0x68   : > { %1421 = vsyncadd (%p2482_p7), [#allocation9], 4294967280 }
  0x69   : > { %268 = sfence }
  0x6a   : > { %p294_p13 = scmp.lt.s32.totalorder %s1440_s21, 1  ;;  %s1609_s7 = sld [smem:[#allocation2]] }
  0x6b   : > { %s1611_s15 = sld [smem:[#allocation2 + $0x1]] }
  0x6c   : > { %s1614_s24 = scalar_select %p294_p13, %s1440_s21, 1 }
  0x6d   : > { %s1616_s29 = sld [smem:[#allocation2 + $0x2]] }
  0x6e   : > { %s1618_s9 = sld [smem:[#allocation2 + $0x3]] }
  0x6f   : > { %s1620_s10 = sld [smem:[#allocation2 + $0x4]] }
  0x70   : > { %s1622_s11 = sld [smem:[#allocation2 + $0x5]]  ;;  %v464_v1 = vstv %s1609_s7 }
  0x71   : > { %s1624_s8 = sld [smem:[#allocation2 + $0x6]]  ;;  %v490_v2 = vstv %s1611_s15 }
  0x72   : > { %s1626_s12 = sld [smem:[#allocation2 + $0x7]] }
  0x73   : > { %s1628_s13 = sld [smem:[#allocation2 + $0x8]]  ;;  %v516_v3 = vstv %s1616_s29 }
  0x74   : > { %s1630_s14 = sld [smem:[#allocation2 + $0x9]]  ;;  %v542_v8 = vstv %s1618_s9 }
  0x75   : > { %s1632_s16 = sld [smem:[#allocation2 + $0xa]]  ;;  %v568_v9 = vstv %s1620_s10 }
  0x76   : > { %s1634_s17 = sld [smem:[#allocation2 + $0xb]]  ;;  %v594_v13 = vstv %s1622_s11 }
  0x77   : > { %s1636_s25 = sld [smem:[#allocation2 + $0xc]]  ;;  %v620_v17 = vstv %s1624_s8 }
  0x78   : > { %s1638_s27 = sld [smem:[#allocation2 + $0xd]]  ;;  %v646_v24 = vstv %s1626_s12 }
  0x79   : > { %s1640_s1 = sld [smem:[#allocation2 + $0xe]]  ;;  %v672_v33 = vstv %s1628_s13 }
  0x7a   : > { %2483 = sst [smem:[#allocation25_spill]] %s1630_s14 }
  0x7b   : > { %2484 = sst [smem:[#allocation26_spill]] %s1632_s16 }
  0x7c   : > { %2485 = sst [smem:[#allocation27_spill]] %s1634_s17 }
  0x7d   : > { %2486 = sst [smem:[#allocation28_spill]] %s1636_s25 }
  0x7e   : > { %2487 = sst [smem:[#allocation29_spill]] %s1638_s27 }
  0x7f   : > { %2488 = sst [smem:[#allocation30_spill]] %s1640_s1 }
  0x80   : > { %s1642_s2 = sld [smem:[#allocation2 + $0xf]] }
  0x81   : > { %s1644_s3 = sld [smem:[#allocation2 + $0x80]] }
  0x82   : > { %s1646_s4 = sld [smem:[#allocation2 + $0x81]] }
  0x83   : > { %s1648_s26 = sld [smem:[#allocation2 + $0x82]] }
  0x84   : > { %s1650_s22 = sld [smem:[#allocation2 + $0x83]] }
  0x85   : > { %s1652_s6 = sld [smem:[#allocation2 + $0x84]] }
  0x86   : > { %2489 = sst [smem:[#allocation31_spill]] %s1642_s2 }
  0x87   : > { %s1654_s20 = sld [smem:[#allocation2 + $0x85]]  ;;  %v466_v5 = vstv %s1644_s3 }
  0x88   : > { %s1656_s30 = sld [smem:[#allocation2 + $0x86]]  ;;  %v492_v10 = vstv %s1646_s4 }
  0x89   : > { %s1658_s18 = sld [smem:[#allocation2 + $0x87]]  ;;  %v518_v12 = vstv %s1648_s26 }
  0x8a   : > { %s1660_s23 = sld [smem:[#allocation2 + $0x88]]  ;;  %v544_v15 = vstv %s1650_s22 }
  0x8b   : > { %s1662_s5 = sld [smem:[#allocation2 + $0x89]]  ;;  %v570_v16 = vstv %s1652_s6 }
  0x8c   : > { %s1664_s28 = sld [smem:[#allocation2 + $0x8a]] }
  0x8d   : > { %s1666_s21 = sld [smem:[#allocation2 + $0x8b]]  ;;  %v596_v20 = vstv %s1654_s20 }
  0x8e   : > { %s1668_s19 = sld [smem:[#allocation2 + $0x8c]]  ;;  %v622_v21 = vstv %s1656_s30 }
  0x8f   : > { %s1670_s2 = sld [smem:[#allocation2 + $0x8d]]  ;;  %v648_v25 = vstv %s1658_s18 }
  0x90   : > { %s1672_s1 = sld [smem:[#allocation2 + $0x8e]]  ;;  %v674_v36 = vstv %s1660_s23 }
  0x91   : > { %2490 = sst [smem:[#allocation32_spill]] %s1662_s5 }
  0x92   : > { %2491 = sst [smem:[#allocation33_spill]] %s1664_s28 }
  0x93   : > { %2492 = sst [smem:[#allocation34_spill]] %s1666_s21 }
  0x94   : > { %2493 = sst [smem:[#allocation35_spill]] %s1668_s19 }
  0x95   : > { %2494 = sst [smem:[#allocation36_spill]] %s1670_s2 }
  0x96   : > { %2495 = sst [smem:[#allocation37_spill]] %s1672_s1 }
  0x97   : > { %s1674_s27 = sld [smem:[#allocation2 + $0x8f]] }
  0x98   : > { %s1676_s25 = sld [smem:[#allocation2 + $0x100]] }
  0x99   : > { %s1678_s17 = sld [smem:[#allocation2 + $0x101]] }
  0x9a   : > { %s1680_s16 = sld [smem:[#allocation2 + $0x102]] }
  0x9b   : > { %s1682_s5 = sld [smem:[#allocation2 + $0x103]] }
  0x9c   : > { %s1684_s28 = sld [smem:[#allocation2 + $0x104]] }
  0x9d   : > { %2496 = sst [smem:[#allocation38_spill]] %s1674_s27 }
  0x9e   : > { %2497 = sst [smem:[#allocation39_spill]] %s1676_s25 }
  0x9f   : > { %2498 = sst [smem:[#allocation40_spill]] %s1678_s17 }
  0xa0   : > { %2499 = sst [smem:[#allocation41_spill]] %s1680_s16 }
  0xa1   : > { %2500 = sst [smem:[#allocation42_spill]] %s1682_s5 }
  0xa2   : > { %2501 = sst [smem:[#allocation43_spill]] %s1684_s28 }
  0xa3   : > { %s1686_s21 = sld [smem:[#allocation2 + $0x105]] }
  0xa4   : > { %s1688_s19 = sld [smem:[#allocation2 + $0x106]] }
  0xa5   : > { %s1690_s2 = sld [smem:[#allocation2 + $0x107]] }
  0xa6   : > { %s1692_s1 = sld [smem:[#allocation2 + $0x108]] }
  0xa7   : > { %s1694_s27 = sld [smem:[#allocation2 + $0x109]] }
  0xa8   : > { %s1696_s25 = sld [smem:[#allocation2 + $0x10a]] }
  0xa9   : > { %2502 = sst [smem:[#allocation44_spill]] %s1686_s21 }
  0xaa   : > { %2503 = sst [smem:[#allocation45_spill]] %s1688_s19  ;;  %s1198_s19 = sshll.u32 %s1614_s24, 3 }
  0xab   : > { %2504 = sst [smem:[#allocation46_spill]] %s1690_s2 }
  0xac   : > { %2505 = sst [smem:[#allocation47_spill]] %s1692_s1 }
  0xad   : > { %2506 = sst [smem:[#allocation48_spill]] %s1694_s27 }
  0xae   : > { %2507 = sst [smem:[#allocation49_spill]] %s1696_s25 }
  0xaf   : > { %s1698_s17 = sld [smem:[#allocation2 + $0x10b]] }
  0xb0   : > { %s1700_s16 = sld [smem:[#allocation2 + $0x10c]] }
  0xb1   : > { %s1702_s28 = sld [smem:[#allocation2 + $0x10d]] }
  0xb2   : > { %s1704_s21 = sld [smem:[#allocation2 + $0x10e]] }
  0xb3   : > { %s1707_s2 = sld [smem:[#allocation2 + $0x10f]] }
  0xb4   : > { %s1709_s1 = sld [smem:[#allocation2 + $0x180]] }
  0xb5   : > { %s1711_s27 = sld [smem:[#allocation2 + $0x181]] }
  0xb6   : > { %2508 = sst [smem:[#allocation50_spill]] %s1700_s16 }
  0xb7   : > { %s2511_s0 = sld [smem:[#allocation53_spill]] }
  0xb8   : > { %2509 = sst [smem:[#allocation51_spill]] %s1704_s21 }
  0xb9   : > { %2510 = sst [smem:[#allocation52_spill]] %s1707_s2 }
  0xba   : > { %s1718_s16 = sld [smem:[#allocation2 + $0x182]] }
  0xbb   : > { %s1720_s21 = sld [smem:[#allocation2 + $0x183]] }
  0xbc   : > { %s1722_s24 = sld [smem:[#allocation2 + $0x184]] }
  0xbd   : > { %s1716_s14 = scalar_lea.vmem %s2511_s0, %s1198_s19  ;;  %s1724_s2 = sld [smem:[#allocation2 + $0x185]] }
  0xbe   : > { %v1727_v0 = vld [vmem:[%s1716_s14] sm:$0x3]  ;;  %s1731_s5 = sld [smem:[#allocation2 + $0x186]]  ;;  %v1737_v4 = vld [vmem:[%s1716_s14 + $0x2] sm:$0x3] }
  0xbf   : > { %s1734_s19 = sld [smem:[#allocation2 + $0x187]]  ;;  %v465_v6 = vmul.f32 %v464_v1, %v1727_v0  ;;  %v491_v7 = vmul.f32 %v490_v2, %v1727_v0  ;;  %v517_v11 = vmul.f32 %v516_v3, %v1727_v0  ;;  %v467_v14 = vmul.f32 %v1737_v4, %v466_v5  ;;  %v1821_v54 = vld [vmem:[%s1716_s14 + $0x4] sm:$0x3] }
  0xc0   : > { %s1740_s25 = sld [smem:[#allocation2 + $0x188]]  ;;  %v543_v18 = vmul.f32 %v542_v8, %v1727_v0  ;;  %v569_v19 = vmul.f32 %v568_v9, %v1727_v0  ;;  %v493_v22 = vmul.f32 %v1737_v4, %v492_v10  ;;  %v519_v23 = vmul.f32 %v1737_v4, %v518_v12 }
  0xc1   : > { %s1746_s7 = sld [smem:[#allocation2 + $0x189]]  ;;  %v545_v26 = vmul.f32 %v1737_v4, %v544_v15  ;;  %v571_v27 = vmul.f32 %v1737_v4, %v570_v16  ;;  %v595_v28 = vmul.f32 %v594_v13, %v1727_v0  ;;  %v621_v29 = vmul.f32 %v620_v17, %v1727_v0 }
  0xc2   : > { %s1752_s3 = sld [smem:[#allocation2 + $0x18a]]  ;;  %v1778_v30 = vadd.f32 %v467_v14, %v465_v6  ;;  %v597_v31 = vmul.f32 %v1737_v4, %v596_v20  ;;  %v623_v32 = vmul.f32 %v1737_v4, %v622_v21  ;;  %v647_v34 = vmul.f32 %v646_v24, %v1727_v0 }
  0xc3   : > { %s1758_s15 = sld [smem:[#allocation2 + $0x18b]]  ;;  %v649_v35 = vmul.f32 %v1737_v4, %v648_v25  ;;  %v494_v38 = vadd.f32 %v493_v22, %v491_v7  ;;  %v1791_v39 = vadd.f32 %v519_v23, %v517_v11  ;;  %v1797_v42 = vadd.f32 %v545_v26, %v543_v18 }
  0xc4   : > { %s1764_s4 = sld [smem:[#allocation2 + $0x18c]]  ;;  %v1799_v43 = vadd.f32 %v571_v27, %v569_v19  ;;  %v673_v44 = vmul.f32 %v672_v33, %v1727_v0  ;;  %v1805_v46 = vadd.f32 %v597_v31, %v595_v28  ;;  %v1807_v47 = vadd.f32 %v623_v32, %v621_v29 }
  0xc5   : > { %s2512_s22 = sld [smem:[#allocation25_spill]]  ;;  %v675_v48 = vmul.f32 %v1737_v4, %v674_v36  ;;  %v1813_v50 = vadd.f32 %v649_v35, %v647_v34 }
  0xc6   : > { %s1770_s26 = sld [smem:[#allocation2 + $0x18d]] }
  0xc7   : > { %s2514_s20 = sld [smem:[#allocation32_spill]]  ;;  %v1854_v14 = vadd.f32 %v675_v48, %v673_v44  ;;  %v807_v44 = vstv %s1702_s28  ;;  %v1902_v48 = vld [vmem:[%s1716_s14 + $0x6] sm:$0x3] }
  0xc8   : > { %s2515_s30 = sld [smem:[#allocation26_spill]] }
  0xc9   : > { %s1776_s6 = sld [smem:[#allocation2 + $0x18e]] }
  0xca   : > { %s2517_s18 = sld [smem:[#allocation33_spill]] }
  0xcb   : > { %s1783_s29 = sld [smem:[#allocation2 + $0x18f]]  ;;  %v698_v37 = vstv %s2512_s22 }
  0xcc   : > { %2513 = sst [smem:[#allocation25_spill]] %s1770_s26  ;;  %v699_v49 = vmul.f32 %v698_v37, %v1727_v0 }
  0xcd   : > { %s1789_s9 = sld [smem:[#allocation5]]  ;;  %v700_v40 = vstv %s2514_s20 }
  0xce   : > { %s2520_s10 = sld [smem:[#allocation27_spill]]  ;;  %v724_v41 = vstv %s2515_s30  ;;  %v701_v51 = vmul.f32 %v1737_v4, %v700_v40 }
  0xcf   : > { %2516 = sst [smem:[#allocation32_spill]] %s1776_s6  ;;  %v725_v52 = vmul.f32 %v724_v41, %v1727_v0  ;;  %v755_v41 = vstv %s1698_s17 }
  0xd0   : > { %s1795_s11 = sld [smem:[#allocation5 + $0x1]]  ;;  %v726_v45 = vstv %s2517_s18  ;;  %v702_v19 = vadd.f32 %v701_v51, %v699_v49 }
  0xd1   : > { %2518 = sst [smem:[#allocation26_spill]] %s1783_s29  ;;  %v727_v55 = vmul.f32 %v1737_v4, %v726_v45 }
  0xd2   : > { %s2522_s8 = sld [smem:[#allocation34_spill]] }
  0xd3   : > { %2519 = sst [smem:[#allocation33_spill]] %s1789_s9  ;;  %v728_v20 = vadd.f32 %v727_v55, %v725_v52 }
  0xd4   : > { %s2523_s23 = sld [smem:[#allocation28_spill]]  ;;  %v750_v53 = vstv %s2520_s10 }
  0xd5   : > { %s2524_s12 = sld [smem:[#allocation35_spill]]  ;;  %v751_v1 = vmul.f32 %v750_v53, %v1727_v0  ;;  %v498_v53 = vstv %s1711_s27 }
  0xd6   : > { %2521 = sst [smem:[#allocation27_spill]] %s1795_s11 }
  0xd7   : > { %s1803_s13 = sld [smem:[#allocation5 + $0x2]] }
  0xd8   : > { %s2526_s22 = sld [smem:[#allocation39_spill]]  ;;  %v752_v56 = vstv %s2522_s8 }
  0xd9   : > { %s2527_s20 = sld [smem:[#allocation40_spill]]  ;;  %v753_v6 = vmul.f32 %v1737_v4, %v752_v56 }
  0xda   : > { %s2528_s30 = sld [smem:[#allocation29_spill]]  ;;  %v776_v57 = vstv %s2523_s23 }
  0xdb   : > { %s2529_s0 = sld [smem:[#allocation36_spill]]  ;;  %v778_v58 = vstv %s2524_s12  ;;  %v777_v7 = vmul.f32 %v776_v57, %v1727_v0  ;;  %v754_v22 = vadd.f32 %v753_v6, %v751_v1  ;;  %v524_v6 = vstv %s1718_s16 }
  0xdc   : > { %s1811_s11 = sld [smem:[#allocation5 + $0x3]]  ;;  %v779_v8 = vmul.f32 %v1737_v4, %v778_v58  ;;  %v756_v58 = vmul.f32 %v1821_v54, %v755_v41 }
  0xdd   : > { %2525 = sst [smem:[#allocation34_spill]] %s1803_s13 }
  0xde   : > { %s2531_s18 = sld [smem:[#allocation41_spill]]  ;;  %v469_v59 = vstv %s2526_s22  ;;  %v780_v23 = vadd.f32 %v779_v8, %v777_v7 }
  0xdf   : > { %s2532_s13 = sld [smem:[#allocation30_spill]]  ;;  %v495_v60 = vstv %s2527_s20  ;;  %v470_v9 = vmul.f32 %v1821_v54, %v469_v59 }
  0xe0   : > { %s2533_s9 = sld [smem:[#allocation37_spill]]  ;;  %v802_v61 = vstv %s2528_s30  ;;  %v496_v10 = vmul.f32 %v1821_v54, %v495_v60  ;;  %v808_v60 = vmul.f32 %v1821_v54, %v807_v44 }
  0xe1   : > { %s1818_s29 = sld [smem:[#allocation5 + $0x4]]  ;;  %v804_v62 = vstv %s2529_s0  ;;  %v803_v11 = vmul.f32 %v802_v61, %v1727_v0  ;;  %v471_v25 = vadd.f32 %v470_v9, %v1778_v30  ;;  %v550_v9 = vstv %s1720_s21 }
  0xe2   : > { %2530 = sst [smem:[#allocation28_spill]] %s1811_s11  ;;  %v805_v12 = vmul.f32 %v1737_v4, %v804_v62  ;;  %v1869_v26 = vadd.f32 %v496_v10, %v494_v38  ;;  %v757_v10 = vadd.f32 %v756_v58, %v754_v22 }
  0xe3   : > { %s2534_s6 = sld [smem:[#allocation42_spill]] }
  0xe4   : > { %s1827_s11 = sld [smem:[#allocation5 + $0x5]]  ;;  %v521_v63 = vstv %s2531_s18  ;;  %v806_v28 = vadd.f32 %v805_v12, %v803_v11  ;;  %v576_v11 = vstv %s1722_s24 }
  0xe5   : > { %s1833_s26 = sld [smem:[#allocation5 + $0x6]]  ;;  %v828_v2 = vstv %s2532_s13  ;;  %v522_v13 = vmul.f32 %v1821_v54, %v521_v63  ;;  %v577_v22 = vmul.f32 %v1902_v48, %v576_v11 }
  0xe6   : > { %v830_v3 = vstv %s2533_s9  ;;  %s1839_s10 = sld [smem:[#allocation5 + $0x7]]  ;;  %v829_v15 = vmul.f32 %v828_v2, %v1727_v0 }
  0xe7   : > { %s2535_s8 = sld [smem:[#allocation43_spill]]  ;;  %v831_v16 = vmul.f32 %v1737_v4, %v830_v3  ;;  %v1875_v29 = vadd.f32 %v522_v13, %v1791_v39 }
  0xe8   : > { %s1845_s23 = sld [smem:[#allocation5 + $0x8]] }
  0xe9   : > { %v547_v5 = vstv %s2534_s6  ;;  %s2537_s0 = sld [smem:[#allocation44_spill]]  ;;  %v832_v32 = vadd.f32 %v831_v16, %v829_v15  ;;  %v525_v15 = vmul.f32 %v1902_v48, %v524_v6  ;;  %v602_v16 = vstv %s1724_s2 }
  0xea   : > { %s2538_s9 = sld [smem:[#allocation31_spill]]  ;;  %v548_v17 = vmul.f32 %v1821_v54, %v547_v5 }
  0xeb   : > { %s1851_s6 = sld [smem:[#allocation5 + $0x9]] }
  0xec   : > { %s2540_s12 = sld [smem:[#allocation45_spill]]  ;;  %v1882_v30 = vadd.f32 %v548_v17, %v1797_v42  ;;  %v628_v17 = vstv %s1731_s5 }
  0xed   : > { %s1858_s13 = sld [smem:[#allocation5 + $0xa]]  ;;  %v573_v18 = vstv %s2535_s8 }
  0xee   : > { %2536 = sst [smem:[#allocation35_spill]] %s1845_s23  ;;  %v574_v31 = vmul.f32 %v1821_v54, %v573_v18  ;;  %v551_v18 = vmul.f32 %v1902_v48, %v550_v9 }
  0xef   : > { %s2542_s22 = sld [smem:[#allocation38_spill]]  ;;  %v599_v21 = vstv %s2537_s0 }
  0xf0   : > { %s1862_s20 = sld [smem:[#allocation5 + $0xb]]  ;;  %v854_v24 = vstv %s2538_s9  ;;  %v600_v34 = vmul.f32 %v1821_v54, %v599_v21  ;;  %v706_v21 = vstv %s1746_s7 }
  0xf1   : > { %2539 = sst [smem:[#allocation39_spill]] %s1851_s6  ;;  %v855_v36 = vmul.f32 %v854_v24, %v1727_v0  ;;  %v472_v0 = vstv %s1709_s1  ;;  %v758_v24 = vstv %s1758_s15 }
  0xf2   : > { %s2543_s30 = sld [smem:[#allocation46_spill]]  ;;  %v625_v27 = vstv %s2540_s12  ;;  %v473_v61 = vmul.f32 %v1902_v48, %v472_v0  ;;  %v601_v2 = vadd.f32 %v600_v34, %v1805_v46  ;;  %v707_v34 = vmul.f32 %v1902_v48, %v706_v21 }
  0xf3   : > { %2541 = sst [smem:[#allocation40_spill]] %s1858_s13  ;;  %v626_v37 = vmul.f32 %v1821_v54, %v625_v27  ;;  %v629_v27 = vmul.f32 %v1902_v48, %v628_v17 }
  0xf4   : > { %s1866_s18 = sld [smem:[#allocation5 + $0xc]] }
  0xf5   : > { %s2545_s6 = sld [smem:[#allocation47_spill]]  ;;  %v856_v33 = vstv %s2542_s22  ;;  %v627_v3 = vadd.f32 %v626_v37, %v1807_v47  ;;  %v809_v47 = vadd.f32 %v808_v60, %v806_v28 }
  0xf6   : > { %s2546_s13 = sld [smem:[#allocation48_spill]]  ;;  %v857_v45 = vmul.f32 %v1737_v4, %v856_v33  ;;  %v575_v4 = vadd.f32 %v574_v31, %v1799_v43  ;;  %v499_v43 = vmul.f32 %v1902_v48, %v498_v53 }
  0xf7   : > { %s2547_s8 = sld [smem:[#allocation49_spill]]  ;;  %v630_v0 = vadd.f32 %v629_v27, %v627_v3  ;;  %v657_v3 = vstv %s1839_s10 }
  0xf8   : > { %s1872_s23 = sld [smem:[#allocation5 + $0xd]]  ;;  %v651_v35 = vstv %s2543_s30  ;;  %v858_v63 = vadd.f32 %v857_v45, %v855_v36  ;;  %v526_v36 = vadd.f32 %v525_v15, %v1875_v29  ;;  %v578_v41 = vadd.f32 %v577_v22, %v575_v4 }
  0xf9   : > { %s2549_s0 = sld [smem:[#allocation50_spill]]  ;;  %v652_v49 = vmul.f32 %v1821_v54, %v651_v35 }
  0xfa   : > { %2544 = sst [smem:[#allocation29_spill]] %s1866_s18 }
  0xfb   : > { %s1879_s9 = sld [smem:[#allocation5 + $0xe]]  ;;  %v677_v38 = vstv %s2545_s6  ;;  %v653_v5 = vadd.f32 %v652_v49, %v1813_v50  ;;  %v474_v50 = vadd.f32 %v473_v61, %v471_v25  ;;  %v784_v25 = vstv %s1764_s4 }
  0xfc   : > { %s2550_s12 = sld [smem:[#allocation51_spill]]  ;;  %v703_v39 = vstv %s2546_s13  ;;  %v678_v55 = vmul.f32 %v1821_v54, %v677_v38  ;;  %v759_v38 = vmul.f32 %v1902_v48, %v758_v24 }
  0xfd   : > { %s1887_s18 = sld [smem:[#allocation5 + $0xf]]  ;;  %v729_v40 = vstv %s2547_s8  ;;  %v704_v56 = vmul.f32 %v1821_v54, %v703_v39  ;;  %v785_v39 = vmul.f32 %v1902_v48, %v784_v25 }
  0xfe   : > { %2548 = sst [smem:[#allocation36_spill]] %s1872_s23  ;;  %v730_v57 = vmul.f32 %v1821_v54, %v729_v40  ;;  %v679_v7 = vadd.f32 %v678_v55, %v1854_v14  ;;  %v500_v14 = vadd.f32 %v499_v43, %v1869_v26  ;;  %v603_v26 = vmul.f32 %v1902_v48, %v602_v16 }
  0xff   : > { %s2551_s23 = sld [smem:[#allocation52_spill]]  ;;  %v781_v42 = vstv %s2549_s0  ;;  %v705_v8 = vadd.f32 %v704_v56, %v702_v19  ;;  %v654_v19 = vstv %s1734_s19  ;;  %v552_v40 = vadd.f32 %v551_v18, %v1882_v30 }
 0x100   : > { %s1893_s22 = sld [smem:[#allocation7]]  ;;  %v782_v59 = vmul.f32 %v1821_v54, %v781_v42  ;;  %v604_v29 = vadd.f32 %v603_v26, %v601_v2  ;;  %v631_v2 = vstv %s1833_s26 }
 0x101   : > { %s1899_s30 = sld [smem:[#allocation7 + $0x1]]  ;;  %v708_v53 = vadd.f32 %v707_v34, %v705_v8  ;;  %v632_v11 = vadd.f32 %v631_v2, %v630_v0  ;;  %v839_v17 = vstv %s1879_s9 }
 0x102   : > { %v833_v51 = vstv %s2550_s12  ;;  %s1914_s28 = sld [smem:[#allocation7 + $0x3]]  ;;  %v783_v46 = vadd.f32 %v782_v59, %v780_v23  ;;  %v732_v23 = vstv %s1752_s3 }
 0x103   : > { %2552 = sst [smem:[#allocation41_spill]] %s1887_s18  ;;  %v834_v62 = vmul.f32 %v1821_v54, %v833_v51  ;;  %v733_v37 = vmul.f32 %v1902_v48, %v732_v23  ;;  %v2032_v27 = vmax.f32 %v632_v11, 0.0 }
 0x104   : > { %s1908_s18 = sld [smem:[#allocation7 + $0x2]]  ;;  %v786_v4 = vadd.f32 %v785_v39, %v783_v46 }
 0x105   : > { %v859_v52 = vstv %s2551_s23  ;;  %s1920_s1 = sld [smem:[#allocation7 + $0x80]]  ;;  %v835_v12 = vadd.f32 %v834_v62, %v832_v32  ;;  %v655_v32 = vmul.f32 %v1902_v48, %v654_v19  ;;  %v579_v62 = vstv %s1818_s29 }
 0x106   : > { %v860_v1 = vmul.f32 %v1821_v54, %v859_v52  ;;  %s1925_s14 = sld [smem:[#allocation7 + $0x81]]  ;;  %v731_v54 = vadd.f32 %v730_v57, %v728_v20  ;;  %v680_v20 = vstv %s1740_s25  ;;  %v760_v57 = vadd.f32 %v759_v38, %v757_v10 }
 0x107   : > { %s1931_s17 = sld [smem:[#allocation7 + $0x82]]  ;;  %v681_v33 = vmul.f32 %v1902_v48, %v680_v20  ;;  %v656_v52 = vadd.f32 %v655_v32, %v653_v5  ;;  %v580_v9 = vadd.f32 %v579_v62, %v578_v41  ;;  %v478_v26 = vstv %s1893_s22 }
 0x108   : > { %s1935_s27 = sld [smem:[#allocation7 + $0x83]]  ;;  %v861_v13 = vadd.f32 %v860_v1, %v858_v63  ;;  %v734_v56 = vadd.f32 %v733_v37, %v731_v54  ;;  %v605_v63 = vstv %s1827_s11  ;;  %v761_v54 = vstv %s1862_s20 }
 0x109   : > { %s1938_s23 = sld [smem:[#allocation7 + $0x100]]  ;;  %v682_v30 = vadd.f32 %v681_v33, %v679_v7  ;;  %v606_v10 = vadd.f32 %v605_v63, %v604_v29  ;;  %v762_v16 = vadd.f32 %v761_v54, %v760_v57  ;;  %v2024_v23 = vmax.f32 %v580_v9, 0.0 }
 0x10a   : > { %s1941_s16 = sld [smem:[#allocation7 + $0x101]]  ;;  %v484_v41 = vstv %s1908_s18 }
 0x10b   : > { %s2553_s21 = sld [smem:[#allocation25_spill]]  ;;  %v2026_v24 = vmax.f32 %v606_v10, 0.0 }
 0x10c   : > { %s2554_s6 = sld [smem:[#allocation32_spill]] }
 0x10d   : > { %s1947_s13 = sld [smem:[#allocation7 + $0x102]]  ;;  %v510_v29 = vstv %s1931_s17 }
 0x10e   : > { %s2555_s24 = sld [smem:[#allocation26_spill]]  ;;  %v513_v0 = vstv %s1935_s27 }
 0x10f   : > { %s1953_s8 = sld [smem:[#allocation7 + $0x103]] }
 0x110   : > { %s1959_s0 = sld [smem:[#allocation7 + $0x180]] }
 0x111   : > { %v810_v28 = vstv %s2553_s21  ;;  %s1965_s2 = sld [smem:[#allocation7 + $0x181]] }
 0x112   : > { %v836_v31 = vstv %s2554_s6  ;;  %s2556_s5 = sld [smem:[#allocation33_spill]]  ;;  %v811_v42 = vmul.f32 %v1902_v48, %v810_v28 }
 0x113   : > { %s1971_s19 = sld [smem:[#allocation7 + $0x182]]  ;;  %v837_v44 = vmul.f32 %v1902_v48, %v836_v31 }
 0x114   : > { %v862_v35 = vstv %s2555_s24  ;;  %s2557_s25 = sld [smem:[#allocation27_spill]]  ;;  %v812_v59 = vadd.f32 %v811_v42, %v809_v47  ;;  %v487_v42 = vstv %s1914_s28 }
 0x115   : > { %s1977_s7 = sld [smem:[#allocation7 + $0x183]]  ;;  %v863_v49 = vmul.f32 %v1902_v48, %v862_v35  ;;  %v838_v60 = vadd.f32 %v837_v44, %v835_v12  ;;  %v658_v12 = vadd.f32 %v657_v3, %v656_v52  ;;  %v2044_v35 = vmax.f32 %v762_v16, 0.0 }
 0x116   : > { %s2558_s3 = sld [smem:[#allocation34_spill]]  ;;  %v504_v44 = vstv %s1920_s1  ;;  %v530_v52 = vstv %s1938_s23 }
 0x117   : > { %s1982_s15 = sld [smem:[#allocation7 + $0x200]]  ;;  %v864_v1 = vadd.f32 %v863_v49, %v861_v13  ;;  %v2034_v28 = vmax.f32 %v658_v12, 0.0  ;;  %v840_v31 = vadd.f32 %v839_v17, %v838_v60  ;;  %v539_v60 = vstv %s1953_s8 }
 0x118   : > { %v475_v45 = vstv %s2556_s5  ;;  %s2560_s4 = sld [smem:[#allocation28_spill]] }
 0x119   : > { %s1986_s12 = sld [smem:[#allocation7 + $0x201]]  ;;  %v476_v48 = vadd.f32 %v475_v45, %v474_v50  ;;  %v507_v45 = vstv %s1925_s14  ;;  %v2065_v49 = vmax.f32 %v840_v31, 0.0  ;;  %v562_v2 = vstv %s1971_s19 }
 0x11a   : > { %v501_v51 = vstv %s2557_s25  ;;  %s1989_s21 = sld [smem:[#allocation7 + $0x202]] }
 0x11b   : > { %s2563_s6 = sld [smem:[#allocation35_spill]]  ;;  %v502_v61 = vadd.f32 %v501_v51, %v500_v14  ;;  %v477_v50 = vmax.f32 %v476_v48, 0.0  ;;  %v565_v3 = vstv %s1977_s7 }
 0x11c   : > { %v527_v55 = vstv %s2558_s3  ;;  %s1992_s24 = sld [smem:[#allocation7 + $0x203]] }
 0x11d   : > { %2559 = sst [smem:[#allocation30_spill]] %s1982_s15  ;;  %v528_v43 = vadd.f32 %v527_v55, %v526_v36  ;;  %v503_v18 = vmax.f32 %v502_v61, 0.0  ;;  %v481_v36 = vstv %s1899_s30  ;;  %v2076_v55 = vmul.f32 %v484_v41, %v477_v50 }
 0x11e   : > { %s2565_s5 = sld [smem:[#allocation39_spill]]  ;;  %v553_v58 = vstv %s2560_s4  ;;  %v2069_v51 = vmul.f32 %v481_v36, %v477_v50 }
 0x11f   : > { %2561 = sst [smem:[#allocation37_spill]] %s1986_s12  ;;  %v554_v6 = vadd.f32 %v553_v58, %v552_v40  ;;  %v529_v19 = vmax.f32 %v528_v43, 0.0  ;;  %v2055_v40 = vmul.f32 %v478_v26, %v477_v50  ;;  %v2080_v57 = vmul.f32 %v504_v44, %v503_v18 }
 0x120   : > { %2562 = sst [smem:[#allocation42_spill]] %s1989_s21  ;;  %v2086_v48 = vmul.f32 %v507_v45, %v503_v18  ;;  %v2088_v58 = vmul.f32 %v510_v29, %v503_v18  ;;  %v559_v43 = vstv %s1965_s2 }
 0x121   : > { %s2566_s25 = sld [smem:[#allocation40_spill]]  ;;  %v683_v5 = vstv %s2563_s6  ;;  %v2022_v22 = vmax.f32 %v554_v6, 0.0  ;;  %v2095_v61 = vmul.f32 %v530_v52, %v529_v19  ;;  %v2110_v6 = vmul.f32 %v539_v60, %v529_v19 }
 0x122   : > { %2564 = sst [smem:[#allocation43_spill]] %s1992_s24  ;;  %v684_v13 = vadd.f32 %v683_v5, %v682_v30  ;;  %v533_v30 = vstv %s1941_s16 }
 0x123   : > { %s1995_s12 = sld [smem:[#allocation7 + $0x280]]  ;;  %v2097_v62 = vmul.f32 %v533_v30, %v529_v19  ;;  %v2129_v11 = vmul.f32 %v562_v2, %v2022_v22  ;;  %v2132_v12 = vmul.f32 %v565_v3, %v2022_v22 }
 0x124   : > { %s2567_s3 = sld [smem:[#allocation29_spill]]  ;;  %v709_v7 = vstv %s2565_s5  ;;  %v2038_v32 = vmax.f32 %v684_v13, 0.0 }
 0x125   : > { %s2568_s21 = sld [smem:[#allocation36_spill]]  ;;  %v710_v14 = vadd.f32 %v709_v7, %v708_v53  ;;  %v536_v53 = vstv %s1947_s13 }
 0x126   : > { %s1999_s15 = sld [smem:[#allocation7 + $0x281]]  ;;  %v2099_v63 = vmul.f32 %v536_v53, %v529_v19 }
 0x127   : > { %s2004_s24 = sld [smem:[#allocation7 + $0x282]]  ;;  %v735_v8 = vstv %s2566_s25  ;;  %v2040_v33 = vmax.f32 %v710_v14, 0.0 }
 0x128   : > { %s2009_s4 = sld [smem:[#allocation7 + $0x283]]  ;;  %v736_v15 = vadd.f32 %v735_v8, %v734_v56  ;;  %v2078_v56 = vmul.f32 %v487_v42, %v477_v50  ;;  %v2126_v50 = vmul.f32 %v559_v43, %v2022_v22 }
 0x129   : > { %s2013_s29 = sld [smem:[#allocation7 + $0x300]]  ;;  %v608_v10 = vstv %s1995_s12 }
 0x12a   : > { %v787_v46 = vstv %s2567_s3  ;;  %s2569_s26 = sld [smem:[#allocation41_spill]]  ;;  %v2042_v34 = vmax.f32 %v736_v15, 0.0 }
 0x12b   : > { %v813_v47 = vstv %s2568_s21  ;;  %s2015_s11 = sld [smem:[#allocation7 + $0x301]]  ;;  %v788_v20 = vadd.f32 %v787_v46, %v786_v4 }
 0x12c   : > { %s2018_s10 = sld [smem:[#allocation7 + $0x302]]  ;;  %v814_v21 = vadd.f32 %v813_v47, %v812_v59  ;;  %v2090_v59 = vmul.f32 %v513_v0, %v503_v18  ;;  %v611_v46 = vstv %s1999_s15  ;;  %v2152_v18 = vmul.f32 %v608_v10, %v2026_v24 }
 0x12d   : > { %s2020_s20 = sld [smem:[#allocation7 + $0x303]]  ;;  %v2049_v37 = vmax.f32 %v788_v20, 0.0  ;;  %v614_v47 = vstv %s2004_s24  ;;  %v2155_v19 = vmul.f32 %v611_v46, %v2026_v24 }
 0x12e   : > { %s2029_s21 = sld [smem:[#allocation7 + $0x380]]  ;;  %v2051_v38 = vmax.f32 %v814_v21, 0.0  ;;  %v617_v17 = vstv %s2009_s4  ;;  %v2158_v20 = vmul.f32 %v614_v47, %v2026_v24 }
 0x12f   : > { %s2036_s9 = sld [smem:[#allocation7 + $0x381]]  ;;  %v634_v21 = vstv %s2013_s29  ;;  %v2170_v31 = vmul.f32 %v617_v17, %v2026_v24 }
 0x130   : > { %v865_v25 = vstv %s2569_s26  ;;  %s2046_s22 = sld [smem:[#allocation7 + $0x382]]  ;;  %v2178_v42 = vmul.f32 %v634_v21, %v2032_v27 }
 0x131   : > { %v866_v39 = vadd.f32 %v865_v25, %v864_v1  ;;  %s2053_s6 = sld [smem:[#allocation7 + $0x383]]  ;;  %v556_v1 = vstv %s1959_s0 }
 0x132   : > { %s2060_s5 = sld [smem:[#allocation7 + $0x400]]  ;;  %v2118_v9 = vmul.f32 %v556_v1, %v2022_v22  ;;  %v637_v22 = vstv %s2015_s11 }
 0x133   : > { %s2067_s30 = sld [smem:[#allocation7 + $0x401]]  ;;  %v2082_v4 = vmax.f32 %v866_v39, 0.0  ;;  %v643_v25 = vstv %s2020_s20  ;;  %v2186_v0 = vmul.f32 %v637_v22, %v2032_v27 }
 0x134   : > { %s2074_s25 = sld [smem:[#allocation7 + $0x402]]  ;;  %v660_v26 = vstv %s2029_s21  ;;  %v2192_v52 = vmul.f32 %v643_v25, %v2032_v27 }
 0x135   : > { %s2570_s18 = sld [smem:[#allocation30_spill]]  ;;  %v663_v36 = vstv %s2036_s9  ;;  %v2195_v30 = vmul.f32 %v660_v26, %v2034_v28 }
 0x136   : > { %s2084_s28 = sld [smem:[#allocation7 + $0x403]]  ;;  %v666_v39 = vstv %s2046_s22  ;;  %v2200_v53 = vmul.f32 %v663_v36, %v2034_v28 }
 0x137   : > { %s2571_s1 = sld [smem:[#allocation37_spill]]  ;;  %v669_v41 = vstv %s2053_s6  ;;  %v2203_v60 = vmul.f32 %v666_v39, %v2034_v28 }
 0x138   : > { %s2572_s14 = sld [smem:[#allocation42_spill]]  ;;  %v686_v44 = vstv %s2060_s5  ;;  %v2206_v1 = vmul.f32 %v669_v41, %v2034_v28 }
 0x139   : > { %s2573_s17 = sld [smem:[#allocation43_spill]]  ;;  %v689_v45 = vstv %s2067_s30  ;;  %v2213_v2 = vmul.f32 %v686_v44, %v2038_v32 }
 0x13a   : > { %s2093_s27 = sld [smem:[#allocation7 + $0x480]]  ;;  %v692_v29 = vstv %s2074_s25  ;;  %v2216_v3 = vmul.f32 %v689_v45, %v2038_v32 }
 0x13b   : > { %s2102_s23 = sld [smem:[#allocation7 + $0x481]]  ;;  %v582_v5 = vstv %s2570_s18 }
 0x13c   : > { %s2108_s16 = sld [smem:[#allocation7 + $0x482]]  ;;  %v2135_v13 = vmul.f32 %v582_v5, %v2024_v23  ;;  %v695_v43 = vstv %s2084_s28  ;;  %v2219_v5 = vmul.f32 %v692_v29, %v2038_v32 }
 0x13d   : > { %v585_v7 = vstv %s2571_s1  ;;  %s2115_s13 = sld [smem:[#allocation7 + $0x483]]  ;;  %v2232_v47 = vmul.f32 %v695_v43, %v2038_v32 }
 0x13e   : > { %v588_v8 = vstv %s2572_s14  ;;  %s2123_s8 = sld [smem:[#allocation7 + $0x500]]  ;;  %v2140_v14 = vmul.f32 %v585_v7, %v2024_v23 }
 0x13f   : > { %v591_v54 = vstv %s2573_s17  ;;  %s2137_s0 = sld [smem:[#allocation7 + $0x501]]  ;;  %v2143_v15 = vmul.f32 %v588_v8, %v2024_v23 }
 0x140   : > { %v2146_v16 = vmul.f32 %v591_v54, %v2024_v23  ;;  %s2149_s2 = sld [smem:[#allocation8]]  ;;  %v640_v23 = vstv %s2018_s10  ;;  %v712_v8 = vstv %s2093_s27 }
 0x141   : > { %s2161_s19 = sld [smem:[#allocation8 + $0x1]]  ;;  %v2189_v24 = vmul.f32 %v640_v23, %v2032_v27  ;;  %v715_v54 = vstv %s2102_s23  ;;  %v2246_v32 = vmul.f32 %v712_v8, %v2040_v33 }
 0x142   : > { %s2167_s7 = sld [smem:[#allocation8 + $0x2]]  ;;  %v718_v17 = vstv %s2108_s16  ;;  %v2249_v26 = vmul.f32 %v715_v54, %v2040_v33 }
 0x143   : > { %s2175_s15 = sld [smem:[#allocation8 + $0x3]]  ;;  %v2256_v36 = vmul.f32 %v718_v17, %v2040_v33 }
 0x144   : > { %s2183_s12 = sld [smem:[#allocation7 + $0x502]] }
 0x145   : > { %s2197_s24 = sld [smem:[#allocation7 + $0x503]]  ;;  %v741_v44 = vstv %s2137_s0 }
 0x146   : > { %s2209_s3 = sld [smem:[#allocation7 + $0x580]]  ;;  %v460_v27 = vstv %s2149_s2 }
 0x147   : > { %s2221_s4 = sld [smem:[#allocation7 + $0x581]]  ;;  %v461_v28 = vstv %s2161_s19  ;;  %v480_v7 = vadd.f32 %v2055_v40, %v460_v27  ;;  %v721_v40 = vstv %s2115_s13 }
 0x148   : > { %s2227_s29 = sld [smem:[#allocation7 + $0x582]]  ;;  %v462_v10 = vstv %s2167_s7  ;;  %v483_v46 = vadd.f32 %v2069_v51, %v461_v28  ;;  %v2264_v41 = vmul.f32 %v721_v40, %v2040_v33 }
 0x149   : > { %s2235_s26 = sld [smem:[#allocation7 + $0x583]]  ;;  %v463_v21 = vstv %s2175_s15  ;;  %v486_v22 = vadd.f32 %v2076_v55, %v462_v10  ;;  %v506_v23 = vadd.f32 %v2080_v57, %v480_v7 }
 0x14a   : > { %s2241_s11 = sld [smem:[#allocation7 + $0x600]]  ;;  %v489_v25 = vadd.f32 %v2078_v56, %v463_v21  ;;  %v509_v51 = vadd.f32 %v2086_v48, %v483_v46  ;;  %v738_v56 = vstv %s2123_s8  ;;  %v744_v45 = vstv %s2183_s12 }
 0x14b   : > { %s2251_s10 = sld [smem:[#allocation7 + $0x601]]  ;;  %v512_v55 = vadd.f32 %v2088_v58, %v486_v22  ;;  %v532_v57 = vadd.f32 %v2095_v61, %v506_v23  ;;  %v747_v29 = vstv %s2197_s24  ;;  %v745_v7 = vmul.f32 %v744_v45, %v2042_v34 }
 0x14c   : > { %s2259_s20 = sld [smem:[#allocation7 + $0x602]]  ;;  %v515_v48 = vadd.f32 %v2090_v59, %v489_v25  ;;  %v535_v39 = vadd.f32 %v2097_v62, %v509_v51  ;;  %v2278_v62 = vmul.f32 %v738_v56, %v2042_v34  ;;  %v764_v33 = vstv %s2209_s3 }
 0x14d   : > { %s2267_s21 = sld [smem:[#allocation7 + $0x603]]  ;;  %v538_v58 = vadd.f32 %v2099_v63, %v512_v55  ;;  %v558_v61 = vadd.f32 %v2118_v9, %v532_v57  ;;  %v742_v9 = vmul.f32 %v741_v44, %v2042_v34  ;;  %v767_v28 = vstv %s2221_s4 }
 0x14e   : > { %s2273_s9 = sld [smem:[#allocation7 + $0x680]]  ;;  %v541_v43 = vadd.f32 %v2110_v6, %v515_v48  ;;  %v561_v59 = vadd.f32 %v2126_v50, %v535_v39  ;;  %v2293_v8 = vmul.f32 %v747_v29, %v2042_v34  ;;  %v765_v54 = vmul.f32 %v764_v33, %v2044_v35 }
 0x14f   : > { %s2281_s22 = sld [smem:[#allocation7 + $0x681]]  ;;  %v564_v27 = vadd.f32 %v2129_v11, %v538_v58  ;;  %v584_v63 = vadd.f32 %v2135_v13, %v558_v61  ;;  %v770_v10 = vstv %s2227_s29  ;;  %v768_v46 = vmul.f32 %v767_v28, %v2044_v35 }
 0x150   : > { %s2287_s6 = sld [smem:[#allocation7 + $0x682]]  ;;  %v567_v6 = vadd.f32 %v2132_v12, %v541_v43  ;;  %v587_v50 = vadd.f32 %v2140_v14, %v561_v59  ;;  %v773_v34 = vstv %s2235_s26  ;;  %v790_v17 = vstv %s2241_s11  ;;  %s1456_s26 = smov [#allocation10]  }
 0x151   : > { %s2295_s5 = sld [smem:[#allocation7 + $0x683]]  ;;  %v590_v11 = vadd.f32 %v2143_v15, %v564_v27  ;;  %v610_v13 = vadd.f32 %v2152_v18, %v584_v63  ;;  %v793_v21 = vstv %s2251_s10  ;;  %v791_v51 = vmul.f32 %v790_v17, %v2049_v37  ;;  %s1364_s11 = sshll.u32 %s1456_s26, 4  ;;  %s1365_s11 = int_to_ptr.vmem [resolvable:$false] %s1364_s11 }
 0x152   : > { %s2301_s30 = sld [smem:[#allocation7 + $0x700]]  ;;  %v593_v12 = vadd.f32 %v2146_v16, %v567_v6  ;;  %v613_v14 = vadd.f32 %v2155_v19, %v587_v50  ;;  %v771_v19 = vmul.f32 %v770_v10, %v2044_v35  ;;  %v796_v23 = vstv %s2259_s20  ;;  %s1366_s10 = scalar_lea.vmem %s1365_s11, 256 }
 0x153   : > { %s2307_s25 = sld [smem:[#allocation7 + $0x701]]  ;;  %v616_v15 = vadd.f32 %v2158_v20, %v590_v11  ;;  %v636_v18 = vadd.f32 %v2178_v42, %v610_v13  ;;  %v774_v42 = vmul.f32 %v773_v34, %v2044_v35  ;;  %v799_v25 = vstv %s2267_s21 }
 0x154   : > { %s2313_s18 = sld [smem:[#allocation7 + $0x702]]  ;;  %v619_v22 = vadd.f32 %v2170_v31, %v593_v12  ;;  %v639_v16 = vadd.f32 %v2186_v0, %v613_v14  ;;  %v794_v55 = vmul.f32 %v793_v21, %v2049_v37  ;;  %v816_v57 = vstv %s2273_s9 }
 0x155   : > { %s2319_s28 = sld [smem:[#allocation7 + $0x703]]  ;;  %v642_v40 = vadd.f32 %v2189_v24, %v616_v15  ;;  %v662_v20 = vadd.f32 %v2195_v30, %v636_v18  ;;  %v797_v30 = vmul.f32 %v796_v23, %v2049_v37  ;;  %v800_v56 = vmul.f32 %v799_v25, %v2049_v37 }
 0x156   : > { %s2325_s1 = sld [smem:[#allocation7 + $0x780]]  ;;  %v645_v31 = vadd.f32 %v2192_v52, %v619_v22  ;;  %v665_v0 = vadd.f32 %v2200_v53, %v639_v16  ;;  %v819_v48 = vstv %s2281_s22  ;;  %v822_v39 = vstv %s2287_s6 }
 0x157   : > { %s2331_s14 = sld [smem:[#allocation7 + $0x781]]  ;;  %v668_v24 = vadd.f32 %v2203_v60, %v642_v40  ;;  %v688_v35 = vadd.f32 %v2213_v2, %v662_v20  ;;  %v825_v44 = vstv %s2295_s5 }
 0x158   : > { %s2574_s17 = sld [smem:[#allocation16_spill]]  ;;  %v671_v52 = vadd.f32 %v2206_v1, %v645_v31  ;;  %v691_v53 = vadd.f32 %v2216_v3, %v665_v0  ;;  %v817_v1 = vmul.f32 %v816_v57, %v2051_v38  ;;  %v842_v3 = vstv %s2301_s30 }
 0x159   : > { %s2337_s27 = sld [smem:[#allocation7 + $0x782]]  ;;  %v694_v60 = vadd.f32 %v2219_v5, %v668_v24  ;;  %v714_v2 = vadd.f32 %v2246_v32, %v688_v35  ;;  %v820_v5 = vmul.f32 %v819_v48, %v2051_v38  ;;  %v845_v32 = vstv %s2307_s25 }
 0x15a   : > { %s2343_s23 = sld [smem:[#allocation7 + $0x783]]  ;;  %v697_v58 = vadd.f32 %v2232_v47, %v671_v52  ;;  %v717_v61 = vadd.f32 %v2249_v26, %v691_v53  ;;  %v823_v26 = vmul.f32 %v822_v39, %v2051_v38  ;;  %v826_v43 = vmul.f32 %v825_v44, %v2051_v38 }
 0x15b   : > { %v720_v37 = vadd.f32 %v2256_v36, %v694_v60  ;;  %v740_v45 = vadd.f32 %v2278_v62, %v714_v2  ;;  %v843_v36 = vmul.f32 %v842_v3, %v2065_v49  ;;  %v848_v27 = vstv %s2313_s18  ;;  %s2575_s8 = sld [smem:[#allocation18_spill]] }
 0x15c   : > { %v723_v29 = vadd.f32 %v2264_v41, %v697_v58  ;;  %v743_v47 = vadd.f32 %v742_v9, %v717_v61  ;;  %v846_v41 = vmul.f32 %v845_v32, %v2065_v49  ;;  %v868_v28 = vstv %s2325_s1  ;;  %s2576_s7 = sld [smem:[#allocation22_spill]] }
 0x15d   : > { %v746_v59 = vadd.f32 %v745_v7, %v720_v37  ;;  %v766_v33 = vadd.f32 %v765_v54, %v740_v45  ;;  %v851_v50 = vstv %s2319_s28  ;;  %v871_v11 = vstv %s2331_s14  ;;  %s2577_s24 = sld [smem:[#allocation58_spill]] }
 0x15e   : > { %s291_s16 = sand.u32 1, %s2574_s17   ;;  %v749_v62 = vadd.f32 %v2293_v8, %v723_v29  ;;  %v769_v63 = vadd.f32 %v768_v46, %v743_v47  ;;  %v849_v13 = vmul.f32 %v848_v27, %v2065_v49  ;;  %v869_v14 = vmul.f32 %v868_v28, %v2082_v4 }
 0x15f   : > { %s1040_s13 = sshll.u32 %s291_s16, 3  ;;  %v772_v9 = vadd.f32 %v771_v19, %v746_v59  ;;  %v792_v6 = vadd.f32 %v791_v51, %v766_v33  ;;  %v874_v54 = vstv %s2337_s27  ;;  %v852_v15 = vmul.f32 %v851_v50, %v2065_v49  ;;  %s2388_s4 = scalar_lea.sflag [#allocation3], %s291_s16 }
 0x160   : > { %v775_v38 = vadd.f32 %v774_v42, %v749_v62  ;;  %v795_v7 = vadd.f32 %v794_v55, %v769_v63  ;;  %v877_v34 = vstv %s2343_s23  ;;  %v872_v18 = vmul.f32 %v871_v11, %v2082_v4  ;;  %s293_s2 = scalar_lea.vmem [#allocation10], %s1040_s13 }
 0x161   : > { %v798_v10 = vadd.f32 %v797_v30, %v772_v9  ;;  %v818_v12 = vadd.f32 %v817_v1, %v792_v6  ;;  %v875_v22 = vmul.f32 %v874_v54, %v2082_v4  ;;  %v878_v23 = vmul.f32 %v877_v34, %v2082_v4  ;;  %s1199_s0 = sshll.u32 %s2575_s8, 7  ;;  %s902_s19 = sshll.u32 %s293_s2, 4  ;;  %s2384_s19 = int_to_ptr.vmem [resolvable:$true] %s902_s19 }
 0x162   : > { %v801_v8 = vadd.f32 %v800_v56, %v775_v38  ;;  %v821_v46 = vadd.f32 %v820_v5, %v795_v7  ;;  %s1360_s29 = scalar_lea.vmem %s2384_s19, 128  ;;  %p2578_p9 = scmp.ne.s32.totalorder %s2576_s7, 0 }
 0x163   : > { %v824_v17 = vadd.f32 %v823_v26, %v798_v10  ;;  %v844_v21 = vadd.f32 %v843_v36, %v818_v12  ;;  %s2382_s3 = scalar_lea.hbm %s2577_s24, %s1199_s0  ;;  %p1361_p1 = scmp.ne.s32.totalorder %s2384_s19, %s1360_s29 }
 0x164   : > { %v827_v16 = vadd.f32 %v826_v43, %v801_v8  ;;  %v847_v19 = vadd.f32 %v846_v41, %v821_v46  ;;  %p1367_p4 = scmp.lt.s32.totalorder %s2384_s19, %s1365_s11  ;;  %p1368_p10 = scmp.lt.s32.totalorder %s1366_s10, %s1360_s29 }
 0x165   : > { %v850_v40 = vadd.f32 %v849_v13, %v824_v17  ;;  %v870_v20 = vadd.f32 %v869_v14, %v844_v21  ;;  %p1362_p8 = pnand %p1361_p1, %p2578_p9 }
 0x166   : > { %v853_v42 = vadd.f32 %v852_v15, %v827_v16  ;;  %v873_v25 = vadd.f32 %v872_v18, %v847_v19  ;;  %p1369_p11 = por %p1368_p10, %p1367_p4 }
 0x167   : > { %v876_v49 = vadd.f32 %v875_v22, %v850_v40  ;;  %880 = vst [vmem:[%s293_s2] sm:$0x3] %v870_v20  ;;  %p1363_p12 = pneg %p1362_p8 }
 0x168   : > { %v879_v4 = vadd.f32 %v878_v23, %v853_v42  ;;  %1190 = vst [vmem:[%s293_s2 + $0x2] sm:$0x3] %v873_v25 }
 0x169   : > { %1191 = vst [vmem:[%s293_s2 + $0x4] sm:$0x3] %v876_v49  ;;  %p1370_p0 = pnand %p1369_p11, %p1363_p12 }
 0x16a   : > { %1192 = vst [vmem:[%s293_s2 + $0x6] sm:$0x3] %v879_v4 }
 0x16b   : > { %1373 = shalt.err (!%p1370_p0)
}
 0x16c   : > { %s1374_s20 = scalar_lea.hbm %s2382_s3, 128  ;;  %s1378_s22 = scalar_lea.hbm %s2577_s24, 256 }
 0x16d   : > { %p1375_p2 = scmp.ne.s32.totalorder %s2382_s3, %s1374_s20  ;;  %p1379_p6 = scmp.lt.s32.totalorder %s2382_s3, %s2577_s24 }
 0x16e   : > { %p1380_p7 = scmp.lt.s32.totalorder %s1378_s22, %s1374_s20 }
 0x16f   : > { %p1376_p3 = pnand %p1375_p2, %p2578_p9 }
 0x170   : > { %p1381_p13 = por %p1380_p7, %p1379_p6 }
 0x171   : > { %p1377_p5 = pneg %p1376_p3 }
 0x173   : > { %p1382_p1 = pnand %p1381_p13, %p1377_p5 }
 0x175   : > { %1385 = shalt.err (!%p1382_p1)
}
 0x176   : > { %s1457_s30 = smov 32   ;;  %s1458_s25 = smov 2  }
 0x177   : > { %1216 = dma.vmem_to_hbm [thread:$0]  (%p2578_p9), %s2384_s19, 128, %s2382_s3, %s2388_s4, %s1457_s30, %s1457_s30, %s1458_s25  }
 0x178 PF: > { %s2579_s18 = sld [smem:[#allocation20_spill]] }
 0x179   : > { %s2580_s28 = sld [smem:[#allocation15_spill]] }
 0x17a   : > { %s2581_s1 = sld [smem:[#allocation23_spill]] }
 0x17e   : > { %p1243_p8 = scmp.ge.s32.totalorder %s2579_s18, 2 }
 0x17f   : > { %s917_s14 = sand.u32 1, %s2580_s28  }
 0x180   : > { %p2582_p12 = scmp.ne.s32.totalorder %s2581_s1, 0  ;;  %s918_s17 = scalar_lea.sflag [#allocation3], %s917_s14 }
 0x182   : > { %p1232_p4 = pnand %p1243_p8, %p2582_p12 }
 0x184   : > { %p1233_p10 = pneg %p1232_p4 }
 0x186   : > { %1423 = dma.done.wait (%p1233_p10), %s918_s17, 128  }
 0x187   : > { %1425 = vsyncadd (%p1233_p10), %s918_s17, 4294967168  ;;  %s21_s23 = sadd.s32 1, %s2579_s18   ;;  %s2583_s18 = sld [smem:[#allocation16_spill]] }
 0x188   : > { %p18_p11 = scmp.ge.s32.totalorder %s21_s23, 4   ;;  %s2584_s19 = sld [smem:[#allocation17_spill]] }
 0x189   : > { %s2585_s20 = sld [smem:[#allocation24_spill]] }
 0x18a   : > { %s2586_s21 = sld [smem:[#allocation19_spill]]  ;;  %20 = sbr.rel (!%p18_p11) target bundleno = 14 (0xe), region = 98 }
 0x18b   : > { %s2587_s22 = sld [smem:[#allocation21_spill]] }
 0x18f   :  { %923 = vsyncpa [#allocation3], 1 }
 0x190   :  { %925 = vsyncpa [#allocation3 + $0x1], 1 }
 0x191   :  { %926 = vsyncpa [#allocation4], 1 }
 0x192   :  { %928 = vsyncpa [#allocation4 + $0x1], 1 }
 0x193   :  { %929 = vsyncpa [#allocation6], 1 }
 0x194   :  { %930 = vsyncpa [#allocation9], 1 }

</bundles_post_ra>
